<compile_context>
chip_gen: v7x
topology: tpu7x:2x2x1
jax: 0.10.0
libtpu: 0.0.40
codegen_flags: <defaults>
</compile_context>

<pallas_src>
import jax
import jax.numpy as jnp
from jax.experimental import pallas as pl
from jax.experimental.pallas import tpu as pltpu

NUM_HEADS = 4
LN_EPS = 1e-5
NORM_EPS = 1e-12  # F.normalize default eps


# ---------------------------------------------------------------------------
# Fused kernel factory: LN -> 1x1 conv -> dw 3x3 (roll+mask) for both streams
# -> multi-head attention -> 1x1 out conv + residual.  One folded-batch block
# (c, b_tile*hw) per grid step.
# ---------------------------------------------------------------------------
def _make_kernel(c, h, w, b_tile, num_heads, mm_dtype):
    hw = h * w
    L = hw // num_heads
    lanes = b_tile * hw
    # tap t = (dy+1)*3 + (dx+1)  ==  PyTorch dw-weight index ky*3+kx
    shifts = tuple(dy * w + dx for dy in (-1, 0, 1) for dx in (-1, 0, 1))

    def kernel(w12_ref, cur_ref, pre_ref,
               ln2_g, ln2_b, ln1_g, ln1_b,
               qv1_pw_w, qv1_pw_b, qv1_dw_w, qv1_dw_b,
               kv_pw_w, kv_pw_b, kv_dw_w, kv_dw_b,
               tap_mask_ref, head_ind_ref, out_w, out_b,
               o_ref, ho_ref):
        cur = cur_ref[...]                      # (c, lanes), channel-first
        pre = pre_ref[...]
        tmask = tap_mask_ref[...]               # (9, lanes) border masks

        def mm(a, bm):                          # MXU matmul, f32 accumulate
            return jnp.dot(a.astype(mm_dtype), bm.astype(mm_dtype),
                           preferred_element_type=jnp.float32)

        def layernorm(x, g_ref, b_ref):         # WithBias LN over channels
            mu = jnp.mean(x, axis=0, keepdims=True)
            var = jnp.mean((x - mu) ** 2, axis=0, keepdims=True)
            return (x - mu) * jax.lax.rsqrt(var + LN_EPS) * g_ref[...] + b_ref[...]

        def dwconv3x3(x, wt_ref, b_ref):
            # Depthwise 3x3 (padding=1) as 9 lane rotations (XLU) + masked
            # per-channel FMAs (VPU).  No jnp.pad/concat, no MXU, halo exact:
            # rolls that cross an image (or batch) boundary are zeroed by the
            # border mask.  Only one shifted tile is live per tap.
            wt = wt_ref[...]                    # (2c, 9)
            acc = jnp.zeros_like(x)
            for t, s in enumerate(shifts):
                shifted = x if s == 0 else pltpu.roll(x, shift=(-s) % lanes, axis=1)
                if t != 4:                      # center tap needs no mask
                    shifted = shifted * tmask[t]
                acc = acc + shifted * wt[:, t:t + 1]
            return acc + b_ref[...]

        # cur -> norm2 -> 1x1 conv -> depthwise 3x3  => (q | v1)
        cur_ln = layernorm(cur, ln2_g, ln2_b)
        qv1 = dwconv3x3(mm(qv1_pw_w[...], cur_ln) + qv1_pw_b[...],
                        qv1_dw_w, qv1_dw_b)                       # (2c, lanes)

        # pre -> norm1 -> 1x1 conv -> depthwise 3x3  => (k | v2)
        pre_ln = layernorm(pre, ln1_g, ln1_b)
        kv = dwconv3x3(mm(kv_pw_w[...], pre_ln) + kv_pw_b[...],
                       kv_dw_w, kv_dw_b)                          # (2c, lanes)

        q, v1 = qv1[:c, :], qv1[c:, :]
        k, v2 = kv[:c, :], kv[c:, :]
        v = w12_ref[0] * v1 + w12_ref[1] * v2                     # (c, lanes)

        # Hoisted L2 norms: two wide reductions (matmul vs. the one-hot head
        # indicator) instead of 2*b_tile*num_heads narrow XLU reductions.
        hi = head_ind_ref[...]                                    # (lanes, bt*nh)
        ssq_q = jnp.dot(q * q, hi, preferred_element_type=jnp.float32)
        ssq_k = jnp.dot(k * k, hi, preferred_element_type=jnp.float32)
        inv_q = 1.0 / jnp.maximum(jnp.sqrt(ssq_q), NORM_EPS)
        inv_k = 1.0 / jnp.maximum(jnp.sqrt(ssq_k), NORM_EPS)

        for t in range(b_tile):                 # per folded batch element
            for hh in range(num_heads):         # heads are contiguous lane slices
                j = t * num_heads + hh
                lo = t * hw + hh * L
                sl = slice(lo, lo + L)
                qn = (q[:, sl] * inv_q[:, j:j + 1]).astype(mm_dtype)
                kn = (k[:, sl] * inv_k[:, j:j + 1]).astype(mm_dtype)
                # q @ k^T without materializing a transpose (contract last dims)
                att = jax.lax.dot_general(qn, kn, (((1,), (1,)), ((), ())),
                                          preferred_element_type=jnp.float32)
                # logits are cosine similarities in [-1,1]; no max-subtraction.
                e = jnp.exp(att)
                p = e * pl.reciprocal(jnp.sum(e, axis=-1, keepdims=True),
                                      approx=True)
                ho_ref[:, sl] = jnp.dot(p.astype(mm_dtype),
                                        v[:, sl].astype(mm_dtype),
                                        preferred_element_type=jnp.float32)

        # out 1x1 conv + bias + residual, applied once -> single lane-dense store.
        o_ref[...] = mm(out_w[...], ho_ref[...]) + out_b[...] + cur

    return kernel


# ---------------------------------------------------------------------------
# Wrapper helpers.
# ---------------------------------------------------------------------------
def _pick_btile(b, hw):
    """Fold batch into lanes until the lane width reaches a full vreg (128)."""
    for t in range(1, b + 1):
        if b % t == 0 and t * hw >= 128:
            return t
    return b


def _tap_masks(h, w, b_tile):
    """(9, b_tile*h*w) validity masks for the 9 dw-conv taps (padding=1)."""
    hw = h * w
    yy = jnp.arange(hw) // w
    xx = jnp.arange(hw) % w
    rows = []
    for dy in (-1, 0, 1):
        for dx in (-1, 0, 1):
            valid = ((yy + dy >= 0) & (yy + dy < h)
                     & (xx + dx >= 0) & (xx + dx < w))
            rows.append(valid.astype(jnp.float32))
    return jnp.tile(jnp.stack(rows, 0), (1, b_tile))


def _head_indicator(hw, b_tile, num_heads):
    """(b_tile*hw, b_tile*num_heads) one-hot map lane -> (batch, head)."""
    L = hw // num_heads
    lanes = b_tile * hw
    lane = jnp.arange(lanes)
    col = (lane // hw) * num_heads + (lane % hw) // L
    return (col[:, None] == jnp.arange(b_tile * num_heads)[None, :]
            ).astype(jnp.float32)


# ---------------------------------------------------------------------------
# Wrapper.  Mirrors Atten.forward(pre, cur, w1, w2); like the PyTorch code the
# positional w1/w2 args are ignored (self.w1/self.w2 -> params['w12']).
# ---------------------------------------------------------------------------
def atten_forward(params, pre, cur, w1=None, w2=None):
    del w1, w2
    b, c, h, w = pre.shape
    hw = h * w
    assert hw % NUM_HEADS == 0, "h*w must be divisible by num_heads=4"
    c2 = 2 * c

    b_tile = _pick_btile(b, hw)
    nblk = b // b_tile
    lanes = b_tile * hw
    n_bh = b_tile * NUM_HEADS

    # bf16 MXU operands (f32 accumulate) when the contractions are big enough
    # to be MXU-bound (v6e/v7x feedback); at c<=8 keep exact f32 (v5e feedback).
    mm_dtype = jnp.bfloat16 if c >= 16 else jnp.float32

    def fold(x):   # NCHW -> (nblk, c, b_tile*hw): batch folded into lanes
        return (x.reshape(nblk, b_tile, c, hw)
                 .transpose(0, 2, 1, 3)
                 .reshape(nblk, c, lanes))

    cur_f = fold(cur)
    pre_f = fold(pre)
    tap_masks = _tap_masks(h, w, b_tile)              # (9, lanes) constants
    head_ind = _head_indicator(hw, b_tile, NUM_HEADS)  # (lanes, n_bh)
    qv1_dw_w = params['qv1_dw_w'].reshape(c2, 9)
    kv_dw_w = params['kv_dw_w'].reshape(c2, 9)

    def wspec(shape):                    # full-array (resident) weight block
        return pl.BlockSpec(shape, lambda i: (0,) * len(shape))

    act_spec = pl.BlockSpec((None, c, lanes), lambda i: (i, 0, 0))

    # scoped-VMEM budget from actual block sizes (double-buffered) + headroom
    elems = (3 * c * lanes + 4 * c + 2 * (c2 * c + 11 * c2) + 9 * lanes
             + lanes * n_bh + c * c + c)
    vmem_limit = int(min(max(4 * (2 * elems + 32 * c2 * lanes), 16 << 20),
                         64 << 20))

    out = pl.pallas_call(
        _make_kernel(c, h, w, b_tile, NUM_HEADS, mm_dtype),
        out_shape=jax.ShapeDtypeStruct((nblk, c, lanes), jnp.float32),
        grid=(nblk,),
        in_specs=[
            pl.BlockSpec(memory_space=pltpu.SMEM),    # w12 scalars
            act_spec, act_spec,                       # cur, pre
            wspec((c, 1)), wspec((c, 1)),             # ln2 gamma / beta
            wspec((c, 1)), wspec((c, 1)),             # ln1 gamma / beta
            wspec((c2, c)), wspec((c2, 1)),           # conv_qv1 1x1
            wspec((c2, 9)), wspec((c2, 1)),           # conv_qv1 depthwise
            wspec((c2, c)), wspec((c2, 1)),           # conv_kv 1x1
            wspec((c2, 9)), wspec((c2, 1)),           # conv_kv depthwise
            wspec((9, lanes)),                        # dw-conv border masks
            wspec((lanes, n_bh)),                     # head indicator (L2 hoist)
            wspec((c, c)), wspec((c, 1)),             # conv_out
        ],
        out_specs=act_spec,
        scratch_shapes=[pltpu.VMEM((c, lanes), jnp.float32)],  # head accumulator
        compiler_params=pltpu.CompilerParams(
            dimension_semantics=("parallel",),        # blocks across TCs (v7x)
            vmem_limit_bytes=vmem_limit,
        ),
    )(params['w12'], cur_f, pre_f,
      params['ln2_g'], params['ln2_b'], params['ln1_g'], params['ln1_b'],
      params['qv1_pw_w'], params['qv1_pw_b'], qv1_dw_w, params['qv1_dw_b'],
      params['kv_pw_w'], params['kv_pw_b'], kv_dw_w, params['kv_dw_b'],
      tap_masks, head_ind, params['out_w'], params['out_b'])

    return (out.reshape(nblk, c, b_tile, hw)
               .transpose(0, 2, 1, 3)
               .reshape(b, c, h, w))                  # back to NCHW


# ---------------------------------------------------------------------------
# Pure-JAX reference (same parameter layout) for correctness checking.
# ---------------------------------------------------------------------------
def ref_forward(params, pre, cur):
    b, c, h, w = pre.shape
    hw = h * w
    L = hw // NUM_HEADS

    def ln(x, g, bb):
        xc = x.reshape(b, c, hw)
        mu = xc.mean(axis=1, keepdims=True)
        var = ((xc - mu) ** 2).mean(axis=1, keepdims=True)      # unbiased=False
        y = (xc - mu) / jnp.sqrt(var + LN_EPS) * g.reshape(1, c, 1) \
            + bb.reshape(1, c, 1)
        return y.reshape(b, c, h, w)

    def pw(x, wt, bs):                   # wt: (cout, cin)
        return jnp.einsum('oi,bihw->bohw', wt, x) + bs.reshape(1, -1, 1, 1)

    def dw(x, wt, bs):                   # wt: (C2, 3, 3)
        xp = jnp.pad(x, ((0, 0), (0, 0), (1, 1), (1, 1)))
        acc = 0.0
        for ky in range(3):
            for kx in range(3):
                acc = acc + xp[:, :, ky:ky + h, kx:kx + w] \
                    * wt[:, ky, kx].reshape(1, -1, 1, 1)
        return acc + bs.reshape(1, -1, 1, 1)

    pre_ln = ln(pre, params['ln1_g'], params['ln1_b'])
    cur_ln = ln(cur, params['ln2_g'], params['ln2_b'])
    qv1 = dw(pw(cur_ln, params['qv1_pw_w'], params['qv1_pw_b']),
             params['qv1_dw_w'], params['qv1_dw_b'])
    kv = dw(pw(pre_ln, params['kv_pw_w'], params['kv_pw_b']),
            params['kv_dw_w'], params['kv_dw_b'])
    q, v1 = qv1[:, :c], qv1[:, c:]
    k, v2 = kv[:, :c], kv[:, c:]

    def heads(x):
        return jnp.transpose(x.reshape(b, c, NUM_HEADS, L), (0, 2, 1, 3))

    def l2n(x):
        return x / jnp.maximum(jnp.linalg.norm(x, axis=-1, keepdims=True), NORM_EPS)

    qh, kh, v1h, v2h = heads(q), heads(k), heads(v1), heads(v2)
    att = jnp.einsum('bhcl,bhdl->bhcd', l2n(qh), l2n(kh))
    att = jax.nn.softmax(att, axis=-1)
    v = params['w12'][0] * v1h + params['w12'][1] * v2h
    out = jnp.einsum('bhcd,bhdl->bhcl', att, v)
    out = jnp.transpose(out, (0, 2, 1, 3)).reshape(b, c, h, w)
    return pw(out, params['out_w'], params['out_b']) + cur


# ---------------------------------------------------------------------------
# Deterministic synthetic parameters (shapes from Atten.__init__).
# ---------------------------------------------------------------------------
def init_params(key, c):
    ks = jax.random.split(key, 16)

    def rn(k, shape, scale=0.1):
        return scale * jax.random.normal(k, shape, jnp.float32)

    c2 = 2 * c
    return dict(
        ln1_g=1.0 + rn(ks[0], (c, 1)), ln1_b=rn(ks[1], (c, 1)),
        ln2_g=1.0 + rn(ks[2], (c, 1)), ln2_b=rn(ks[3], (c, 1)),
        qv1_pw_w=rn(ks[4], (c2, c)), qv1_pw_b=rn(ks[5], (c2, 1)),
        qv1_dw_w=rn(ks[6], (c2, 3, 3)), qv1_dw_b=rn(ks[7], (c2, 1)),
        kv_pw_w=rn(ks[8], (c2, c)), kv_pw_b=rn(ks[9], (c2, 1)),
        kv_dw_w=rn(ks[10], (c2, 3, 3)), kv_dw_b=rn(ks[11], (c2, 1)),
        out_w=rn(ks[12], (c, c)), out_b=rn(ks[13], (c, 1)),
        w12=jax.random.normal(ks[14], (2,), jnp.float32),   # self.w1, self.w2
    )


if __name__ == "__main__":
    b, c, h, w = 2, 8, 8, 8          # h*w divisible by num_heads=4
    key = jax.random.PRNGKey(0)
    k1, k2, kp = jax.random.split(key, 3)
    pre = jax.random.normal(k1, (b, c, h, w), jnp.float32)
    cur = jax.random.normal(k2, (b, c, h, w), jnp.float32)
    params = init_params(kp, c)

    out = jax.jit(atten_forward)(params, pre, cur)
    out = jax.block_until_ready(out)
    assert out.shape == (b, c, h, w)

    ref = ref_forward(params, pre, cur)
    max_err = float(jnp.max(jnp.abs(out - ref)))
    assert max_err < 2e-3, f"mismatch vs reference: {max_err}"

    print("KERNEL_OK")
</pallas_src>

<mosaic_0001>
module attributes {stable_mosaic.version = 11 : i64} {
  func.func @kernel(%arg0: i32, %arg1: memref<2xf32, #tpu.memory_space<smem>>, %arg2: memref<1x8x128xf32, #tpu.memory_space<vmem>>, %arg3: memref<1x8x128xf32, #tpu.memory_space<vmem>>, %arg4: memref<8x1xf32, #tpu.memory_space<vmem>>, %arg5: memref<8x1xf32, #tpu.memory_space<vmem>>, %arg6: memref<8x1xf32, #tpu.memory_space<vmem>>, %arg7: memref<8x1xf32, #tpu.memory_space<vmem>>, %arg8: memref<16x8xf32, #tpu.memory_space<vmem>>, %arg9: memref<16x1xf32, #tpu.memory_space<vmem>>, %arg10: memref<16x9xf32, #tpu.memory_space<vmem>>, %arg11: memref<16x1xf32, #tpu.memory_space<vmem>>, %arg12: memref<16x8xf32, #tpu.memory_space<vmem>>, %arg13: memref<16x1xf32, #tpu.memory_space<vmem>>, %arg14: memref<16x9xf32, #tpu.memory_space<vmem>>, %arg15: memref<16x1xf32, #tpu.memory_space<vmem>>, %arg16: memref<9x128xf32, #tpu.memory_space<vmem>>, %arg17: memref<128x8xf32, #tpu.memory_space<vmem>>, %arg18: memref<8x8xf32, #tpu.memory_space<vmem>>, %arg19: memref<8x1xf32, #tpu.memory_space<vmem>>, %arg20: memref<1x8x128xf32, #tpu.memory_space<vmem>>, %arg21: memref<8x128xf32, #tpu.memory_space<vmem>>) attributes {dimension_semantics = [#tpu.dimension_semantics<parallel>], iteration_bounds = array<i64: 1>, scalar_prefetch = 0 : i64, scratch_operands = 1 : i64, tpu.core_type = #tpu.core_type<tc>, window_params = [{transform_indices = @transform_0, window_bounds = array<i64: 2>}, {transform_indices = @transform_1, window_bounds = array<i64: 1, 8, 128>}, {transform_indices = @transform_2, window_bounds = array<i64: 1, 8, 128>}, {pipeline_mode = #tpu.pipeline_mode<synchronous>, transform_indices = @transform_3, window_bounds = array<i64: 8, 1>}, {pipeline_mode = #tpu.pipeline_mode<synchronous>, transform_indices = @transform_4, window_bounds = array<i64: 8, 1>}, {pipeline_mode = #tpu.pipeline_mode<synchronous>, transform_indices = @transform_5, window_bounds = array<i64: 8, 1>}, {pipeline_mode = #tpu.pipeline_mode<synchronous>, transform_indices = @transform_6, window_bounds = array<i64: 8, 1>}, {pipeline_mode = #tpu.pipeline_mode<synchronous>, transform_indices = @transform_7, window_bounds = array<i64: 16, 8>}, {pipeline_mode = #tpu.pipeline_mode<synchronous>, transform_indices = @transform_8, window_bounds = array<i64: 16, 1>}, {pipeline_mode = #tpu.pipeline_mode<synchronous>, transform_indices = @transform_9, window_bounds = array<i64: 16, 9>}, {pipeline_mode = #tpu.pipeline_mode<synchronous>, transform_indices = @transform_10, window_bounds = array<i64: 16, 1>}, {pipeline_mode = #tpu.pipeline_mode<synchronous>, transform_indices = @transform_11, window_bounds = array<i64: 16, 8>}, {pipeline_mode = #tpu.pipeline_mode<synchronous>, transform_indices = @transform_12, window_bounds = array<i64: 16, 1>}, {pipeline_mode = #tpu.pipeline_mode<synchronous>, transform_indices = @transform_13, window_bounds = array<i64: 16, 9>}, {pipeline_mode = #tpu.pipeline_mode<synchronous>, transform_indices = @transform_14, window_bounds = array<i64: 16, 1>}, {pipeline_mode = #tpu.pipeline_mode<synchronous>, transform_indices = @transform_15, window_bounds = array<i64: 9, 128>}, {pipeline_mode = #tpu.pipeline_mode<synchronous>, transform_indices = @transform_16, window_bounds = array<i64: 128, 8>}, {pipeline_mode = #tpu.pipeline_mode<synchronous>, transform_indices = @transform_17, window_bounds = array<i64: 8, 8>}, {pipeline_mode = #tpu.pipeline_mode<synchronous>, transform_indices = @transform_18, window_bounds = array<i64: 8, 1>}, {transform_indices = @transform_19, window_bounds = array<i64: 1, 8, 128>}]} {
    %c0 = arith.constant 0 : index
    %c0_0 = arith.constant 0 : index
    %c0_1 = arith.constant 0 : index
    %0 = vector.load %arg2[%c0, %c0_0, %c0_1] : memref<1x8x128xf32, #tpu.memory_space<vmem>>, vector<1x8x128xf32>
    %1 = vector.shape_cast %0 : vector<1x8x128xf32> to vector<8x128xf32>
    %c0_2 = arith.constant 0 : index
    %c0_3 = arith.constant 0 : index
    %c0_4 = arith.constant 0 : index
    %2 = vector.load %arg3[%c0_2, %c0_3, %c0_4] : memref<1x8x128xf32, #tpu.memory_space<vmem>>, vector<1x8x128xf32>
    %3 = vector.shape_cast %2 : vector<1x8x128xf32> to vector<8x128xf32>
    %c0_5 = arith.constant 0 : index
    %c0_6 = arith.constant 0 : index
    %4 = vector.load %arg16[%c0_5, %c0_6] : memref<9x128xf32, #tpu.memory_space<vmem>>, vector<9x128xf32>
    %cst = arith.constant dense<0.000000e+00> : vector<128xf32>
    %5 = vector.multi_reduction <add>, %1, %cst [0] : vector<8x128xf32> to vector<128xf32>
    %6 = vector.shape_cast %5 : vector<128xf32> to vector<1x128xf32>
    %cst_7 = arith.constant 8.000000e+00 : f32
    %7 = vector.broadcast %cst_7 : f32 to vector<1x128xf32>
    %8 = arith.divf %6, %7 : vector<1x128xf32>
    %9 = vector.broadcast %8 : vector<1x128xf32> to vector<8x128xf32>
    %10 = arith.subf %1, %9 : vector<8x128xf32>
    %11 = arith.mulf %10, %10 : vector<8x128xf32>
    %cst_8 = arith.constant dense<0.000000e+00> : vector<128xf32>
    %12 = vector.multi_reduction <add>, %11, %cst_8 [0] : vector<8x128xf32> to vector<128xf32>
    %13 = vector.shape_cast %12 : vector<128xf32> to vector<1x128xf32>
    %cst_9 = arith.constant 8.000000e+00 : f32
    %14 = vector.broadcast %cst_9 : f32 to vector<1x128xf32>
    %15 = arith.divf %13, %14 : vector<1x128xf32>
    %16 = vector.broadcast %8 : vector<1x128xf32> to vector<8x128xf32>
    %17 = arith.subf %1, %16 : vector<8x128xf32>
    %cst_10 = arith.constant 9.99999974E-6 : f32
    %18 = vector.broadcast %cst_10 : f32 to vector<1x128xf32>
    %19 = arith.addf %15, %18 : vector<1x128xf32>
    %20 = math.rsqrt %19 : vector<1x128xf32>
    %21 = vector.broadcast %20 : vector<1x128xf32> to vector<8x128xf32>
    %22 = arith.mulf %17, %21 : vector<8x128xf32>
    %c0_11 = arith.constant 0 : index
    %c0_12 = arith.constant 0 : index
    %23 = vector.load %arg4[%c0_11, %c0_12] : memref<8x1xf32, #tpu.memory_space<vmem>>, vector<8x1xf32>
    %24 = vector.broadcast %23 : vector<8x1xf32> to vector<8x128xf32>
    %25 = arith.mulf %22, %24 : vector<8x128xf32>
    %c0_13 = arith.constant 0 : index
    %c0_14 = arith.constant 0 : index
    %26 = vector.load %arg5[%c0_13, %c0_14] : memref<8x1xf32, #tpu.memory_space<vmem>>, vector<8x1xf32>
    %27 = vector.broadcast %26 : vector<8x1xf32> to vector<8x128xf32>
    %28 = arith.addf %25, %27 : vector<8x128xf32>
    %c0_15 = arith.constant 0 : index
    %c0_16 = arith.constant 0 : index
    %29 = vector.load %arg8[%c0_15, %c0_16] : memref<16x8xf32, #tpu.memory_space<vmem>>, vector<16x8xf32>
    %cst_17 = arith.constant dense<0.000000e+00> : vector<16x128xf32>
    %30 = tpu.matmul %29, %28, %cst_17 {dimension_numbers = #tpu.dot_dimension_numbers<[1], [0], [0], [1], [0, 0, 1, 1], [], []>} : vector<16x8xf32>, vector<8x128xf32>, vector<16x128xf32> -> vector<16x128xf32>
    %c0_18 = arith.constant 0 : index
    %c0_19 = arith.constant 0 : index
    %31 = vector.load %arg9[%c0_18, %c0_19] : memref<16x1xf32, #tpu.memory_space<vmem>>, vector<16x1xf32>
    %32 = vector.broadcast %31 : vector<16x1xf32> to vector<16x128xf32>
    %33 = arith.addf %30, %32 : vector<16x128xf32>
    %c0_20 = arith.constant 0 : index
    %c0_21 = arith.constant 0 : index
    %34 = vector.load %arg10[%c0_20, %c0_21] : memref<16x9xf32, #tpu.memory_space<vmem>>, vector<16x9xf32>
    %cst_22 = arith.constant 0.000000e+00 : f32
    %35 = vector.broadcast %cst_22 : f32 to vector<16x128xf32>
    %c9_i32 = arith.constant 9 : i32
    %36 = tpu.dynamic_rotate %33 by %c9_i32 dim 1 : vector<16x128xf32>, i32 -> vector<16x128xf32>
    %37 = vector.extract_strided_slice %4 {offsets = [0, 0], sizes = [1, 128], strides = [1, 1]} : vector<9x128xf32> to vector<1x128xf32>
    %38 = vector.shape_cast %37 : vector<1x128xf32> to vector<128xf32>
    %39 = vector.shape_cast %38 : vector<128xf32> to vector<1x128xf32>
    %40 = vector.broadcast %39 : vector<1x128xf32> to vector<16x128xf32>
    %41 = arith.mulf %36, %40 : vector<16x128xf32>
    %42 = vector.extract_strided_slice %34 {offsets = [0, 0], sizes = [16, 1], strides = [1, 1]} : vector<16x9xf32> to vector<16x1xf32>
    %43 = vector.broadcast %42 : vector<16x1xf32> to vector<16x128xf32>
    %44 = arith.mulf %41, %43 : vector<16x128xf32>
    %45 = arith.addf %35, %44 : vector<16x128xf32>
    %c8_i32 = arith.constant 8 : i32
    %46 = tpu.dynamic_rotate %33 by %c8_i32 dim 1 : vector<16x128xf32>, i32 -> vector<16x128xf32>
    %47 = vector.extract_strided_slice %4 {offsets = [1, 0], sizes = [1, 128], strides = [1, 1]} : vector<9x128xf32> to vector<1x128xf32>
    %48 = vector.shape_cast %47 : vector<1x128xf32> to vector<128xf32>
    %49 = vector.shape_cast %48 : vector<128xf32> to vector<1x128xf32>
    %50 = vector.broadcast %49 : vector<1x128xf32> to vector<16x128xf32>
    %51 = arith.mulf %46, %50 : vector<16x128xf32>
    %52 = vector.extract_strided_slice %34 {offsets = [0, 1], sizes = [16, 1], strides = [1, 1]} : vector<16x9xf32> to vector<16x1xf32>
    %53 = vector.broadcast %52 : vector<16x1xf32> to vector<16x128xf32>
    %54 = arith.mulf %51, %53 : vector<16x128xf32>
    %55 = arith.addf %45, %54 : vector<16x128xf32>
    %c7_i32 = arith.constant 7 : i32
    %56 = tpu.dynamic_rotate %33 by %c7_i32 dim 1 : vector<16x128xf32>, i32 -> vector<16x128xf32>
    %57 = vector.extract_strided_slice %4 {offsets = [2, 0], sizes = [1, 128], strides = [1, 1]} : vector<9x128xf32> to vector<1x128xf32>
    %58 = vector.shape_cast %57 : vector<1x128xf32> to vector<128xf32>
    %59 = vector.shape_cast %58 : vector<128xf32> to vector<1x128xf32>
    %60 = vector.broadcast %59 : vector<1x128xf32> to vector<16x128xf32>
    %61 = arith.mulf %56, %60 : vector<16x128xf32>
    %62 = vector.extract_strided_slice %34 {offsets = [0, 2], sizes = [16, 1], strides = [1, 1]} : vector<16x9xf32> to vector<16x1xf32>
    %63 = vector.broadcast %62 : vector<16x1xf32> to vector<16x128xf32>
    %64 = arith.mulf %61, %63 : vector<16x128xf32>
    %65 = arith.addf %55, %64 : vector<16x128xf32>
    %c1_i32 = arith.constant 1 : i32
    %66 = tpu.dynamic_rotate %33 by %c1_i32 dim 1 : vector<16x128xf32>, i32 -> vector<16x128xf32>
    %67 = vector.extract_strided_slice %4 {offsets = [3, 0], sizes = [1, 128], strides = [1, 1]} : vector<9x128xf32> to vector<1x128xf32>
    %68 = vector.shape_cast %67 : vector<1x128xf32> to vector<128xf32>
    %69 = vector.shape_cast %68 : vector<128xf32> to vector<1x128xf32>
    %70 = vector.broadcast %69 : vector<1x128xf32> to vector<16x128xf32>
    %71 = arith.mulf %66, %70 : vector<16x128xf32>
    %72 = vector.extract_strided_slice %34 {offsets = [0, 3], sizes = [16, 1], strides = [1, 1]} : vector<16x9xf32> to vector<16x1xf32>
    %73 = vector.broadcast %72 : vector<16x1xf32> to vector<16x128xf32>
    %74 = arith.mulf %71, %73 : vector<16x128xf32>
    %75 = arith.addf %65, %74 : vector<16x128xf32>
    %76 = vector.extract_strided_slice %34 {offsets = [0, 4], sizes = [16, 1], strides = [1, 1]} : vector<16x9xf32> to vector<16x1xf32>
    %77 = vector.broadcast %76 : vector<16x1xf32> to vector<16x128xf32>
    %78 = arith.mulf %33, %77 : vector<16x128xf32>
    %79 = arith.addf %75, %78 : vector<16x128xf32>
    %c127_i32 = arith.constant 127 : i32
    %80 = tpu.dynamic_rotate %33 by %c127_i32 dim 1 : vector<16x128xf32>, i32 -> vector<16x128xf32>
    %81 = vector.extract_strided_slice %4 {offsets = [5, 0], sizes = [1, 128], strides = [1, 1]} : vector<9x128xf32> to vector<1x128xf32>
    %82 = vector.shape_cast %81 : vector<1x128xf32> to vector<128xf32>
    %83 = vector.shape_cast %82 : vector<128xf32> to vector<1x128xf32>
    %84 = vector.broadcast %83 : vector<1x128xf32> to vector<16x128xf32>
    %85 = arith.mulf %80, %84 : vector<16x128xf32>
    %86 = vector.extract_strided_slice %34 {offsets = [0, 5], sizes = [16, 1], strides = [1, 1]} : vector<16x9xf32> to vector<16x1xf32>
    %87 = vector.broadcast %86 : vector<16x1xf32> to vector<16x128xf32>
    %88 = arith.mulf %85, %87 : vector<16x128xf32>
    %89 = arith.addf %79, %88 : vector<16x128xf32>
    %c121_i32 = arith.constant 121 : i32
    %90 = tpu.dynamic_rotate %33 by %c121_i32 dim 1 : vector<16x128xf32>, i32 -> vector<16x128xf32>
    %91 = vector.extract_strided_slice %4 {offsets = [6, 0], sizes = [1, 128], strides = [1, 1]} : vector<9x128xf32> to vector<1x128xf32>
    %92 = vector.shape_cast %91 : vector<1x128xf32> to vector<128xf32>
    %93 = vector.shape_cast %92 : vector<128xf32> to vector<1x128xf32>
    %94 = vector.broadcast %93 : vector<1x128xf32> to vector<16x128xf32>
    %95 = arith.mulf %90, %94 : vector<16x128xf32>
    %96 = vector.extract_strided_slice %34 {offsets = [0, 6], sizes = [16, 1], strides = [1, 1]} : vector<16x9xf32> to vector<16x1xf32>
    %97 = vector.broadcast %96 : vector<16x1xf32> to vector<16x128xf32>
    %98 = arith.mulf %95, %97 : vector<16x128xf32>
    %99 = arith.addf %89, %98 : vector<16x128xf32>
    %c120_i32 = arith.constant 120 : i32
    %100 = tpu.dynamic_rotate %33 by %c120_i32 dim 1 : vector<16x128xf32>, i32 -> vector<16x128xf32>
    %101 = vector.extract_strided_slice %4 {offsets = [7, 0], sizes = [1, 128], strides = [1, 1]} : vector<9x128xf32> to vector<1x128xf32>
    %102 = vector.shape_cast %101 : vector<1x128xf32> to vector<128xf32>
    %103 = vector.shape_cast %102 : vector<128xf32> to vector<1x128xf32>
    %104 = vector.broadcast %103 : vector<1x128xf32> to vector<16x128xf32>
    %105 = arith.mulf %100, %104 : vector<16x128xf32>
    %106 = vector.extract_strided_slice %34 {offsets = [0, 7], sizes = [16, 1], strides = [1, 1]} : vector<16x9xf32> to vector<16x1xf32>
    %107 = vector.broadcast %106 : vector<16x1xf32> to vector<16x128xf32>
    %108 = arith.mulf %105, %107 : vector<16x128xf32>
    %109 = arith.addf %99, %108 : vector<16x128xf32>
    %c119_i32 = arith.constant 119 : i32
    %110 = tpu.dynamic_rotate %33 by %c119_i32 dim 1 : vector<16x128xf32>, i32 -> vector<16x128xf32>
    %111 = vector.extract_strided_slice %4 {offsets = [8, 0], sizes = [1, 128], strides = [1, 1]} : vector<9x128xf32> to vector<1x128xf32>
    %112 = vector.shape_cast %111 : vector<1x128xf32> to vector<128xf32>
    %113 = vector.shape_cast %112 : vector<128xf32> to vector<1x128xf32>
    %114 = vector.broadcast %113 : vector<1x128xf32> to vector<16x128xf32>
    %115 = arith.mulf %110, %114 : vector<16x128xf32>
    %116 = vector.extract_strided_slice %34 {offsets = [0, 8], sizes = [16, 1], strides = [1, 1]} : vector<16x9xf32> to vector<16x1xf32>
    %117 = vector.broadcast %116 : vector<16x1xf32> to vector<16x128xf32>
    %118 = arith.mulf %115, %117 : vector<16x128xf32>
    %119 = arith.addf %109, %118 : vector<16x128xf32>
    %c0_23 = arith.constant 0 : index
    %c0_24 = arith.constant 0 : index
    %120 = vector.load %arg11[%c0_23, %c0_24] : memref<16x1xf32, #tpu.memory_space<vmem>>, vector<16x1xf32>
    %121 = vector.broadcast %120 : vector<16x1xf32> to vector<16x128xf32>
    %122 = arith.addf %119, %121 : vector<16x128xf32>
    %cst_25 = arith.constant dense<0.000000e+00> : vector<128xf32>
    %123 = vector.multi_reduction <add>, %3, %cst_25 [0] : vector<8x128xf32> to vector<128xf32>
    %124 = vector.shape_cast %123 : vector<128xf32> to vector<1x128xf32>
    %cst_26 = arith.constant 8.000000e+00 : f32
    %125 = vector.broadcast %cst_26 : f32 to vector<1x128xf32>
    %126 = arith.divf %124, %125 : vector<1x128xf32>
    %127 = vector.broadcast %126 : vector<1x128xf32> to vector<8x128xf32>
    %128 = arith.subf %3, %127 : vector<8x128xf32>
    %129 = arith.mulf %128, %128 : vector<8x128xf32>
    %cst_27 = arith.constant dense<0.000000e+00> : vector<128xf32>
    %130 = vector.multi_reduction <add>, %129, %cst_27 [0] : vector<8x128xf32> to vector<128xf32>
    %131 = vector.shape_cast %130 : vector<128xf32> to vector<1x128xf32>
    %cst_28 = arith.constant 8.000000e+00 : f32
    %132 = vector.broadcast %cst_28 : f32 to vector<1x128xf32>
    %133 = arith.divf %131, %132 : vector<1x128xf32>
    %134 = vector.broadcast %126 : vector<1x128xf32> to vector<8x128xf32>
    %135 = arith.subf %3, %134 : vector<8x128xf32>
    %cst_29 = arith.constant 9.99999974E-6 : f32
    %136 = vector.broadcast %cst_29 : f32 to vector<1x128xf32>
    %137 = arith.addf %133, %136 : vector<1x128xf32>
    %138 = math.rsqrt %137 : vector<1x128xf32>
    %139 = vector.broadcast %138 : vector<1x128xf32> to vector<8x128xf32>
    %140 = arith.mulf %135, %139 : vector<8x128xf32>
    %c0_30 = arith.constant 0 : index
    %c0_31 = arith.constant 0 : index
    %141 = vector.load %arg6[%c0_30, %c0_31] : memref<8x1xf32, #tpu.memory_space<vmem>>, vector<8x1xf32>
    %142 = vector.broadcast %141 : vector<8x1xf32> to vector<8x128xf32>
    %143 = arith.mulf %140, %142 : vector<8x128xf32>
    %c0_32 = arith.constant 0 : index
    %c0_33 = arith.constant 0 : index
    %144 = vector.load %arg7[%c0_32, %c0_33] : memref<8x1xf32, #tpu.memory_space<vmem>>, vector<8x1xf32>
    %145 = vector.broadcast %144 : vector<8x1xf32> to vector<8x128xf32>
    %146 = arith.addf %143, %145 : vector<8x128xf32>
    %c0_34 = arith.constant 0 : index
    %c0_35 = arith.constant 0 : index
    %147 = vector.load %arg12[%c0_34, %c0_35] : memref<16x8xf32, #tpu.memory_space<vmem>>, vector<16x8xf32>
    %cst_36 = arith.constant dense<0.000000e+00> : vector<16x128xf32>
    %148 = tpu.matmul %147, %146, %cst_36 {dimension_numbers = #tpu.dot_dimension_numbers<[1], [0], [0], [1], [0, 0, 1, 1], [], []>} : vector<16x8xf32>, vector<8x128xf32>, vector<16x128xf32> -> vector<16x128xf32>
    %c0_37 = arith.constant 0 : index
    %c0_38 = arith.constant 0 : index
    %149 = vector.load %arg13[%c0_37, %c0_38] : memref<16x1xf32, #tpu.memory_space<vmem>>, vector<16x1xf32>
    %150 = vector.broadcast %149 : vector<16x1xf32> to vector<16x128xf32>
    %151 = arith.addf %148, %150 : vector<16x128xf32>
    %c0_39 = arith.constant 0 : index
    %c0_40 = arith.constant 0 : index
    %152 = vector.load %arg14[%c0_39, %c0_40] : memref<16x9xf32, #tpu.memory_space<vmem>>, vector<16x9xf32>
    %cst_41 = arith.constant 0.000000e+00 : f32
    %153 = vector.broadcast %cst_41 : f32 to vector<16x128xf32>
    %c9_i32_42 = arith.constant 9 : i32
    %154 = tpu.dynamic_rotate %151 by %c9_i32_42 dim 1 : vector<16x128xf32>, i32 -> vector<16x128xf32>
    %155 = vector.extract_strided_slice %4 {offsets = [0, 0], sizes = [1, 128], strides = [1, 1]} : vector<9x128xf32> to vector<1x128xf32>
    %156 = vector.shape_cast %155 : vector<1x128xf32> to vector<128xf32>
    %157 = vector.shape_cast %156 : vector<128xf32> to vector<1x128xf32>
    %158 = vector.broadcast %157 : vector<1x128xf32> to vector<16x128xf32>
    %159 = arith.mulf %154, %158 : vector<16x128xf32>
    %160 = vector.extract_strided_slice %152 {offsets = [0, 0], sizes = [16, 1], strides = [1, 1]} : vector<16x9xf32> to vector<16x1xf32>
    %161 = vector.broadcast %160 : vector<16x1xf32> to vector<16x128xf32>
    %162 = arith.mulf %159, %161 : vector<16x128xf32>
    %163 = arith.addf %153, %162 : vector<16x128xf32>
    %c8_i32_43 = arith.constant 8 : i32
    %164 = tpu.dynamic_rotate %151 by %c8_i32_43 dim 1 : vector<16x128xf32>, i32 -> vector<16x128xf32>
    %165 = vector.extract_strided_slice %4 {offsets = [1, 0], sizes = [1, 128], strides = [1, 1]} : vector<9x128xf32> to vector<1x128xf32>
    %166 = vector.shape_cast %165 : vector<1x128xf32> to vector<128xf32>
    %167 = vector.shape_cast %166 : vector<128xf32> to vector<1x128xf32>
    %168 = vector.broadcast %167 : vector<1x128xf32> to vector<16x128xf32>
    %169 = arith.mulf %164, %168 : vector<16x128xf32>
    %170 = vector.extract_strided_slice %152 {offsets = [0, 1], sizes = [16, 1], strides = [1, 1]} : vector<16x9xf32> to vector<16x1xf32>
    %171 = vector.broadcast %170 : vector<16x1xf32> to vector<16x128xf32>
    %172 = arith.mulf %169, %171 : vector<16x128xf32>
    %173 = arith.addf %163, %172 : vector<16x128xf32>
    %c7_i32_44 = arith.constant 7 : i32
    %174 = tpu.dynamic_rotate %151 by %c7_i32_44 dim 1 : vector<16x128xf32>, i32 -> vector<16x128xf32>
    %175 = vector.extract_strided_slice %4 {offsets = [2, 0], sizes = [1, 128], strides = [1, 1]} : vector<9x128xf32> to vector<1x128xf32>
    %176 = vector.shape_cast %175 : vector<1x128xf32> to vector<128xf32>
    %177 = vector.shape_cast %176 : vector<128xf32> to vector<1x128xf32>
    %178 = vector.broadcast %177 : vector<1x128xf32> to vector<16x128xf32>
    %179 = arith.mulf %174, %178 : vector<16x128xf32>
    %180 = vector.extract_strided_slice %152 {offsets = [0, 2], sizes = [16, 1], strides = [1, 1]} : vector<16x9xf32> to vector<16x1xf32>
    %181 = vector.broadcast %180 : vector<16x1xf32> to vector<16x128xf32>
    %182 = arith.mulf %179, %181 : vector<16x128xf32>
    %183 = arith.addf %173, %182 : vector<16x128xf32>
    %c1_i32_45 = arith.constant 1 : i32
    %184 = tpu.dynamic_rotate %151 by %c1_i32_45 dim 1 : vector<16x128xf32>, i32 -> vector<16x128xf32>
    %185 = vector.extract_strided_slice %4 {offsets = [3, 0], sizes = [1, 128], strides = [1, 1]} : vector<9x128xf32> to vector<1x128xf32>
    %186 = vector.shape_cast %185 : vector<1x128xf32> to vector<128xf32>
    %187 = vector.shape_cast %186 : vector<128xf32> to vector<1x128xf32>
    %188 = vector.broadcast %187 : vector<1x128xf32> to vector<16x128xf32>
    %189 = arith.mulf %184, %188 : vector<16x128xf32>
    %190 = vector.extract_strided_slice %152 {offsets = [0, 3], sizes = [16, 1], strides = [1, 1]} : vector<16x9xf32> to vector<16x1xf32>
    %191 = vector.broadcast %190 : vector<16x1xf32> to vector<16x128xf32>
    %192 = arith.mulf %189, %191 : vector<16x128xf32>
    %193 = arith.addf %183, %192 : vector<16x128xf32>
    %194 = vector.extract_strided_slice %152 {offsets = [0, 4], sizes = [16, 1], strides = [1, 1]} : vector<16x9xf32> to vector<16x1xf32>
    %195 = vector.broadcast %194 : vector<16x1xf32> to vector<16x128xf32>
    %196 = arith.mulf %151, %195 : vector<16x128xf32>
    %197 = arith.addf %193, %196 : vector<16x128xf32>
    %c127_i32_46 = arith.constant 127 : i32
    %198 = tpu.dynamic_rotate %151 by %c127_i32_46 dim 1 : vector<16x128xf32>, i32 -> vector<16x128xf32>
    %199 = vector.extract_strided_slice %4 {offsets = [5, 0], sizes = [1, 128], strides = [1, 1]} : vector<9x128xf32> to vector<1x128xf32>
    %200 = vector.shape_cast %199 : vector<1x128xf32> to vector<128xf32>
    %201 = vector.shape_cast %200 : vector<128xf32> to vector<1x128xf32>
    %202 = vector.broadcast %201 : vector<1x128xf32> to vector<16x128xf32>
    %203 = arith.mulf %198, %202 : vector<16x128xf32>
    %204 = vector.extract_strided_slice %152 {offsets = [0, 5], sizes = [16, 1], strides = [1, 1]} : vector<16x9xf32> to vector<16x1xf32>
    %205 = vector.broadcast %204 : vector<16x1xf32> to vector<16x128xf32>
    %206 = arith.mulf %203, %205 : vector<16x128xf32>
    %207 = arith.addf %197, %206 : vector<16x128xf32>
    %c121_i32_47 = arith.constant 121 : i32
    %208 = tpu.dynamic_rotate %151 by %c121_i32_47 dim 1 : vector<16x128xf32>, i32 -> vector<16x128xf32>
    %209 = vector.extract_strided_slice %4 {offsets = [6, 0], sizes = [1, 128], strides = [1, 1]} : vector<9x128xf32> to vector<1x128xf32>
    %210 = vector.shape_cast %209 : vector<1x128xf32> to vector<128xf32>
    %211 = vector.shape_cast %210 : vector<128xf32> to vector<1x128xf32>
    %212 = vector.broadcast %211 : vector<1x128xf32> to vector<16x128xf32>
    %213 = arith.mulf %208, %212 : vector<16x128xf32>
    %214 = vector.extract_strided_slice %152 {offsets = [0, 6], sizes = [16, 1], strides = [1, 1]} : vector<16x9xf32> to vector<16x1xf32>
    %215 = vector.broadcast %214 : vector<16x1xf32> to vector<16x128xf32>
    %216 = arith.mulf %213, %215 : vector<16x128xf32>
    %217 = arith.addf %207, %216 : vector<16x128xf32>
    %c120_i32_48 = arith.constant 120 : i32
    %218 = tpu.dynamic_rotate %151 by %c120_i32_48 dim 1 : vector<16x128xf32>, i32 -> vector<16x128xf32>
    %219 = vector.extract_strided_slice %4 {offsets = [7, 0], sizes = [1, 128], strides = [1, 1]} : vector<9x128xf32> to vector<1x128xf32>
    %220 = vector.shape_cast %219 : vector<1x128xf32> to vector<128xf32>
    %221 = vector.shape_cast %220 : vector<128xf32> to vector<1x128xf32>
    %222 = vector.broadcast %221 : vector<1x128xf32> to vector<16x128xf32>
    %223 = arith.mulf %218, %222 : vector<16x128xf32>
    %224 = vector.extract_strided_slice %152 {offsets = [0, 7], sizes = [16, 1], strides = [1, 1]} : vector<16x9xf32> to vector<16x1xf32>
    %225 = vector.broadcast %224 : vector<16x1xf32> to vector<16x128xf32>
    %226 = arith.mulf %223, %225 : vector<16x128xf32>
    %227 = arith.addf %217, %226 : vector<16x128xf32>
    %c119_i32_49 = arith.constant 119 : i32
    %228 = tpu.dynamic_rotate %151 by %c119_i32_49 dim 1 : vector<16x128xf32>, i32 -> vector<16x128xf32>
    %229 = vector.extract_strided_slice %4 {offsets = [8, 0], sizes = [1, 128], strides = [1, 1]} : vector<9x128xf32> to vector<1x128xf32>
    %230 = vector.shape_cast %229 : vector<1x128xf32> to vector<128xf32>
    %231 = vector.shape_cast %230 : vector<128xf32> to vector<1x128xf32>
    %232 = vector.broadcast %231 : vector<1x128xf32> to vector<16x128xf32>
    %233 = arith.mulf %228, %232 : vector<16x128xf32>
    %234 = vector.extract_strided_slice %152 {offsets = [0, 8], sizes = [16, 1], strides = [1, 1]} : vector<16x9xf32> to vector<16x1xf32>
    %235 = vector.broadcast %234 : vector<16x1xf32> to vector<16x128xf32>
    %236 = arith.mulf %233, %235 : vector<16x128xf32>
    %237 = arith.addf %227, %236 : vector<16x128xf32>
    %c0_50 = arith.constant 0 : index
    %c0_51 = arith.constant 0 : index
    %238 = vector.load %arg15[%c0_50, %c0_51] : memref<16x1xf32, #tpu.memory_space<vmem>>, vector<16x1xf32>
    %239 = vector.broadcast %238 : vector<16x1xf32> to vector<16x128xf32>
    %240 = arith.addf %237, %239 : vector<16x128xf32>
    %241 = vector.extract_strided_slice %122 {offsets = [0, 0], sizes = [8, 128], strides = [1, 1]} : vector<16x128xf32> to vector<8x128xf32>
    %242 = vector.extract_strided_slice %122 {offsets = [8, 0], sizes = [8, 128], strides = [1, 1]} : vector<16x128xf32> to vector<8x128xf32>
    %243 = vector.extract_strided_slice %240 {offsets = [0, 0], sizes = [8, 128], strides = [1, 1]} : vector<16x128xf32> to vector<8x128xf32>
    %244 = vector.extract_strided_slice %240 {offsets = [8, 0], sizes = [8, 128], strides = [1, 1]} : vector<16x128xf32> to vector<8x128xf32>
    %c0_52 = arith.constant 0 : index
    %245 = memref.load %arg1[%c0_52] : memref<2xf32, #tpu.memory_space<smem>>
    %246 = vector.broadcast %245 : f32 to vector<8x128xf32>
    %247 = arith.mulf %246, %242 : vector<8x128xf32>
    %c1 = arith.constant 1 : index
    %248 = memref.load %arg1[%c1] : memref<2xf32, #tpu.memory_space<smem>>
    %249 = vector.broadcast %248 : f32 to vector<8x128xf32>
    %250 = arith.mulf %249, %244 : vector<8x128xf32>
    %251 = arith.addf %247, %250 : vector<8x128xf32>
    %c0_53 = arith.constant 0 : index
    %c0_54 = arith.constant 0 : index
    %252 = vector.load %arg17[%c0_53, %c0_54] : memref<128x8xf32, #tpu.memory_space<vmem>>, vector<128x8xf32>
    %253 = arith.mulf %241, %241 : vector<8x128xf32>
    %cst_55 = arith.constant dense<0.000000e+00> : vector<8x8xf32>
    %254 = tpu.matmul %253, %252, %cst_55 {dimension_numbers = #tpu.dot_dimension_numbers<[1], [0], [0], [1], [0, 0, 1, 1], [], []>} : vector<8x128xf32>, vector<128x8xf32>, vector<8x8xf32> -> vector<8x8xf32>
    %255 = arith.mulf %243, %243 : vector<8x128xf32>
    %cst_56 = arith.constant dense<0.000000e+00> : vector<8x8xf32>
    %256 = tpu.matmul %255, %252, %cst_56 {dimension_numbers = #tpu.dot_dimension_numbers<[1], [0], [0], [1], [0, 0, 1, 1], [], []>} : vector<8x128xf32>, vector<128x8xf32>, vector<8x8xf32> -> vector<8x8xf32>
    %257 = math.sqrt %254 : vector<8x8xf32>
    %cst_57 = arith.constant 9.99999996E-13 : f32
    %258 = vector.broadcast %cst_57 : f32 to vector<8x8xf32>
    %259 = arith.maximumf %257, %258 : vector<8x8xf32>
    %cst_58 = arith.constant 1.000000e+00 : f32
    %260 = vector.broadcast %cst_58 : f32 to vector<8x8xf32>
    %261 = arith.divf %260, %259 : vector<8x8xf32>
    %262 = math.sqrt %256 : vector<8x8xf32>
    %cst_59 = arith.constant 9.99999996E-13 : f32
    %263 = vector.broadcast %cst_59 : f32 to vector<8x8xf32>
    %264 = arith.maximumf %262, %263 : vector<8x8xf32>
    %cst_60 = arith.constant 1.000000e+00 : f32
    %265 = vector.broadcast %cst_60 : f32 to vector<8x8xf32>
    %266 = arith.divf %265, %264 : vector<8x8xf32>
    %267 = vector.extract_strided_slice %241 {offsets = [0, 0], sizes = [8, 16], strides = [1, 1]} : vector<8x128xf32> to vector<8x16xf32>
    %268 = vector.extract_strided_slice %261 {offsets = [0, 0], sizes = [8, 1], strides = [1, 1]} : vector<8x8xf32> to vector<8x1xf32>
    %269 = vector.broadcast %268 : vector<8x1xf32> to vector<8x16xf32>
    %270 = arith.mulf %267, %269 : vector<8x16xf32>
    %271 = vector.extract_strided_slice %243 {offsets = [0, 0], sizes = [8, 16], strides = [1, 1]} : vector<8x128xf32> to vector<8x16xf32>
    %272 = vector.extract_strided_slice %266 {offsets = [0, 0], sizes = [8, 1], strides = [1, 1]} : vector<8x8xf32> to vector<8x1xf32>
    %273 = vector.broadcast %272 : vector<8x1xf32> to vector<8x16xf32>
    %274 = arith.mulf %271, %273 : vector<8x16xf32>
    %cst_61 = arith.constant dense<0.000000e+00> : vector<8x8xf32>
    %275 = tpu.matmul %270, %274, %cst_61 {dimension_numbers = #tpu.dot_dimension_numbers<[1], [1], [0], [0], [0, 0, 1, 0], [], []>} : vector<8x16xf32>, vector<8x16xf32>, vector<8x8xf32> -> vector<8x8xf32>
    %276 = math.exp %275 : vector<8x8xf32>
    %cst_62 = arith.constant dense<0.000000e+00> : vector<8xf32>
    %277 = vector.multi_reduction <add>, %276, %cst_62 [1] : vector<8x8xf32> to vector<8xf32>
    %278 = vector.shape_cast %277 : vector<8xf32> to vector<8x1xf32>
    %279 = tpu.reciprocal %278 {approx = true} : vector<8x1xf32> -> vector<8x1xf32>
    %280 = vector.broadcast %279 : vector<8x1xf32> to vector<8x8xf32>
    %281 = arith.mulf %276, %280 : vector<8x8xf32>
    %282 = vector.extract_strided_slice %251 {offsets = [0, 0], sizes = [8, 16], strides = [1, 1]} : vector<8x128xf32> to vector<8x16xf32>
    %cst_63 = arith.constant dense<0.000000e+00> : vector<8x16xf32>
    %283 = tpu.matmul %281, %282, %cst_63 {dimension_numbers = #tpu.dot_dimension_numbers<[1], [0], [0], [1], [0, 0, 1, 1], [], []>} : vector<8x8xf32>, vector<8x16xf32>, vector<8x16xf32> -> vector<8x16xf32>
    %c0_64 = arith.constant 0 : index
    %c0_65 = arith.constant 0 : index
    %284 = vector.load %arg21[%c0_64, %c0_65] : memref<8x128xf32, #tpu.memory_space<vmem>>, vector<8x16xf32>
    tpu.vector_store %arg21[%c0_64, %c0_65], %283 {strides = array<i32>} : memref<8x128xf32, #tpu.memory_space<vmem>>, vector<8x16xf32>,
    %285 = vector.extract_strided_slice %241 {offsets = [0, 16], sizes = [8, 16], strides = [1, 1]} : vector<8x128xf32> to vector<8x16xf32>
    %286 = vector.extract_strided_slice %261 {offsets = [0, 1], sizes = [8, 1], strides = [1, 1]} : vector<8x8xf32> to vector<8x1xf32>
    %287 = vector.broadcast %286 : vector<8x1xf32> to vector<8x16xf32>
    %288 = arith.mulf %285, %287 : vector<8x16xf32>
    %289 = vector.extract_strided_slice %243 {offsets = [0, 16], sizes = [8, 16], strides = [1, 1]} : vector<8x128xf32> to vector<8x16xf32>
    %290 = vector.extract_strided_slice %266 {offsets = [0, 1], sizes = [8, 1], strides = [1, 1]} : vector<8x8xf32> to vector<8x1xf32>
    %291 = vector.broadcast %290 : vector<8x1xf32> to vector<8x16xf32>
    %292 = arith.mulf %289, %291 : vector<8x16xf32>
    %cst_66 = arith.constant dense<0.000000e+00> : vector<8x8xf32>
    %293 = tpu.matmul %288, %292, %cst_66 {dimension_numbers = #tpu.dot_dimension_numbers<[1], [1], [0], [0], [0, 0, 1, 0], [], []>} : vector<8x16xf32>, vector<8x16xf32>, vector<8x8xf32> -> vector<8x8xf32>
    %294 = math.exp %293 : vector<8x8xf32>
    %cst_67 = arith.constant dense<0.000000e+00> : vector<8xf32>
    %295 = vector.multi_reduction <add>, %294, %cst_67 [1] : vector<8x8xf32> to vector<8xf32>
    %296 = vector.shape_cast %295 : vector<8xf32> to vector<8x1xf32>
    %297 = tpu.reciprocal %296 {approx = true} : vector<8x1xf32> -> vector<8x1xf32>
    %298 = vector.broadcast %297 : vector<8x1xf32> to vector<8x8xf32>
    %299 = arith.mulf %294, %298 : vector<8x8xf32>
    %300 = vector.extract_strided_slice %251 {offsets = [0, 16], sizes = [8, 16], strides = [1, 1]} : vector<8x128xf32> to vector<8x16xf32>
    %cst_68 = arith.constant dense<0.000000e+00> : vector<8x16xf32>
    %301 = tpu.matmul %299, %300, %cst_68 {dimension_numbers = #tpu.dot_dimension_numbers<[1], [0], [0], [1], [0, 0, 1, 1], [], []>} : vector<8x8xf32>, vector<8x16xf32>, vector<8x16xf32> -> vector<8x16xf32>
    %c0_69 = arith.constant 0 : index
    %c16 = arith.constant 16 : index
    %302 = vector.load %arg21[%c0_69, %c16] : memref<8x128xf32, #tpu.memory_space<vmem>>, vector<8x16xf32>
    tpu.vector_store %arg21[%c0_69, %c16], %301 {strides = array<i32>} : memref<8x128xf32, #tpu.memory_space<vmem>>, vector<8x16xf32>,
    %303 = vector.extract_strided_slice %241 {offsets = [0, 32], sizes = [8, 16], strides = [1, 1]} : vector<8x128xf32> to vector<8x16xf32>
    %304 = vector.extract_strided_slice %261 {offsets = [0, 2], sizes = [8, 1], strides = [1, 1]} : vector<8x8xf32> to vector<8x1xf32>
    %305 = vector.broadcast %304 : vector<8x1xf32> to vector<8x16xf32>
    %306 = arith.mulf %303, %305 : vector<8x16xf32>
    %307 = vector.extract_strided_slice %243 {offsets = [0, 32], sizes = [8, 16], strides = [1, 1]} : vector<8x128xf32> to vector<8x16xf32>
    %308 = vector.extract_strided_slice %266 {offsets = [0, 2], sizes = [8, 1], strides = [1, 1]} : vector<8x8xf32> to vector<8x1xf32>
    %309 = vector.broadcast %308 : vector<8x1xf32> to vector<8x16xf32>
    %310 = arith.mulf %307, %309 : vector<8x16xf32>
    %cst_70 = arith.constant dense<0.000000e+00> : vector<8x8xf32>
    %311 = tpu.matmul %306, %310, %cst_70 {dimension_numbers = #tpu.dot_dimension_numbers<[1], [1], [0], [0], [0, 0, 1, 0], [], []>} : vector<8x16xf32>, vector<8x16xf32>, vector<8x8xf32> -> vector<8x8xf32>
    %312 = math.exp %311 : vector<8x8xf32>
    %cst_71 = arith.constant dense<0.000000e+00> : vector<8xf32>
    %313 = vector.multi_reduction <add>, %312, %cst_71 [1] : vector<8x8xf32> to vector<8xf32>
    %314 = vector.shape_cast %313 : vector<8xf32> to vector<8x1xf32>
    %315 = tpu.reciprocal %314 {approx = true} : vector<8x1xf32> -> vector<8x1xf32>
    %316 = vector.broadcast %315 : vector<8x1xf32> to vector<8x8xf32>
    %317 = arith.mulf %312, %316 : vector<8x8xf32>
    %318 = vector.extract_strided_slice %251 {offsets = [0, 32], sizes = [8, 16], strides = [1, 1]} : vector<8x128xf32> to vector<8x16xf32>
    %cst_72 = arith.constant dense<0.000000e+00> : vector<8x16xf32>
    %319 = tpu.matmul %317, %318, %cst_72 {dimension_numbers = #tpu.dot_dimension_numbers<[1], [0], [0], [1], [0, 0, 1, 1], [], []>} : vector<8x8xf32>, vector<8x16xf32>, vector<8x16xf32> -> vector<8x16xf32>
    %c0_73 = arith.constant 0 : index
    %c32 = arith.constant 32 : index
    %320 = vector.load %arg21[%c0_73, %c32] : memref<8x128xf32, #tpu.memory_space<vmem>>, vector<8x16xf32>
    tpu.vector_store %arg21[%c0_73, %c32], %319 {strides = array<i32>} : memref<8x128xf32, #tpu.memory_space<vmem>>, vector<8x16xf32>,
    %321 = vector.extract_strided_slice %241 {offsets = [0, 48], sizes = [8, 16], strides = [1, 1]} : vector<8x128xf32> to vector<8x16xf32>
    %322 = vector.extract_strided_slice %261 {offsets = [0, 3], sizes = [8, 1], strides = [1, 1]} : vector<8x8xf32> to vector<8x1xf32>
    %323 = vector.broadcast %322 : vector<8x1xf32> to vector<8x16xf32>
    %324 = arith.mulf %321, %323 : vector<8x16xf32>
    %325 = vector.extract_strided_slice %243 {offsets = [0, 48], sizes = [8, 16], strides = [1, 1]} : vector<8x128xf32> to vector<8x16xf32>
    %326 = vector.extract_strided_slice %266 {offsets = [0, 3], sizes = [8, 1], strides = [1, 1]} : vector<8x8xf32> to vector<8x1xf32>
    %327 = vector.broadcast %326 : vector<8x1xf32> to vector<8x16xf32>
    %328 = arith.mulf %325, %327 : vector<8x16xf32>
    %cst_74 = arith.constant dense<0.000000e+00> : vector<8x8xf32>
    %329 = tpu.matmul %324, %328, %cst_74 {dimension_numbers = #tpu.dot_dimension_numbers<[1], [1], [0], [0], [0, 0, 1, 0], [], []>} : vector<8x16xf32>, vector<8x16xf32>, vector<8x8xf32> -> vector<8x8xf32>
    %330 = math.exp %329 : vector<8x8xf32>
    %cst_75 = arith.constant dense<0.000000e+00> : vector<8xf32>
    %331 = vector.multi_reduction <add>, %330, %cst_75 [1] : vector<8x8xf32> to vector<8xf32>
    %332 = vector.shape_cast %331 : vector<8xf32> to vector<8x1xf32>
    %333 = tpu.reciprocal %332 {approx = true} : vector<8x1xf32> -> vector<8x1xf32>
    %334 = vector.broadcast %333 : vector<8x1xf32> to vector<8x8xf32>
    %335 = arith.mulf %330, %334 : vector<8x8xf32>
    %336 = vector.extract_strided_slice %251 {offsets = [0, 48], sizes = [8, 16], strides = [1, 1]} : vector<8x128xf32> to vector<8x16xf32>
    %cst_76 = arith.constant dense<0.000000e+00> : vector<8x16xf32>
    %337 = tpu.matmul %335, %336, %cst_76 {dimension_numbers = #tpu.dot_dimension_numbers<[1], [0], [0], [1], [0, 0, 1, 1], [], []>} : vector<8x8xf32>, vector<8x16xf32>, vector<8x16xf32> -> vector<8x16xf32>
    %c0_77 = arith.constant 0 : index
    %c48 = arith.constant 48 : index
    %338 = vector.load %arg21[%c0_77, %c48] : memref<8x128xf32, #tpu.memory_space<vmem>>, vector<8x16xf32>
    tpu.vector_store %arg21[%c0_77, %c48], %337 {strides = array<i32>} : memref<8x128xf32, #tpu.memory_space<vmem>>, vector<8x16xf32>,
    %339 = vector.extract_strided_slice %241 {offsets = [0, 64], sizes = [8, 16], strides = [1, 1]} : vector<8x128xf32> to vector<8x16xf32>
    %340 = vector.extract_strided_slice %261 {offsets = [0, 4], sizes = [8, 1], strides = [1, 1]} : vector<8x8xf32> to vector<8x1xf32>
    %341 = vector.broadcast %340 : vector<8x1xf32> to vector<8x16xf32>
    %342 = arith.mulf %339, %341 : vector<8x16xf32>
    %343 = vector.extract_strided_slice %243 {offsets = [0, 64], sizes = [8, 16], strides = [1, 1]} : vector<8x128xf32> to vector<8x16xf32>
    %344 = vector.extract_strided_slice %266 {offsets = [0, 4], sizes = [8, 1], strides = [1, 1]} : vector<8x8xf32> to vector<8x1xf32>
    %345 = vector.broadcast %344 : vector<8x1xf32> to vector<8x16xf32>
    %346 = arith.mulf %343, %345 : vector<8x16xf32>
    %cst_78 = arith.constant dense<0.000000e+00> : vector<8x8xf32>
    %347 = tpu.matmul %342, %346, %cst_78 {dimension_numbers = #tpu.dot_dimension_numbers<[1], [1], [0], [0], [0, 0, 1, 0], [], []>} : vector<8x16xf32>, vector<8x16xf32>, vector<8x8xf32> -> vector<8x8xf32>
    %348 = math.exp %347 : vector<8x8xf32>
    %cst_79 = arith.constant dense<0.000000e+00> : vector<8xf32>
    %349 = vector.multi_reduction <add>, %348, %cst_79 [1] : vector<8x8xf32> to vector<8xf32>
    %350 = vector.shape_cast %349 : vector<8xf32> to vector<8x1xf32>
    %351 = tpu.reciprocal %350 {approx = true} : vector<8x1xf32> -> vector<8x1xf32>
    %352 = vector.broadcast %351 : vector<8x1xf32> to vector<8x8xf32>
    %353 = arith.mulf %348, %352 : vector<8x8xf32>
    %354 = vector.extract_strided_slice %251 {offsets = [0, 64], sizes = [8, 16], strides = [1, 1]} : vector<8x128xf32> to vector<8x16xf32>
    %cst_80 = arith.constant dense<0.000000e+00> : vector<8x16xf32>
    %355 = tpu.matmul %353, %354, %cst_80 {dimension_numbers = #tpu.dot_dimension_numbers<[1], [0], [0], [1], [0, 0, 1, 1], [], []>} : vector<8x8xf32>, vector<8x16xf32>, vector<8x16xf32> -> vector<8x16xf32>
    %c0_81 = arith.constant 0 : index
    %c64 = arith.constant 64 : index
    %356 = vector.load %arg21[%c0_81, %c64] : memref<8x128xf32, #tpu.memory_space<vmem>>, vector<8x16xf32>
    tpu.vector_store %arg21[%c0_81, %c64], %355 {strides = array<i32>} : memref<8x128xf32, #tpu.memory_space<vmem>>, vector<8x16xf32>,
    %357 = vector.extract_strided_slice %241 {offsets = [0, 80], sizes = [8, 16], strides = [1, 1]} : vector<8x128xf32> to vector<8x16xf32>
    %358 = vector.extract_strided_slice %261 {offsets = [0, 5], sizes = [8, 1], strides = [1, 1]} : vector<8x8xf32> to vector<8x1xf32>
    %359 = vector.broadcast %358 : vector<8x1xf32> to vector<8x16xf32>
    %360 = arith.mulf %357, %359 : vector<8x16xf32>
    %361 = vector.extract_strided_slice %243 {offsets = [0, 80], sizes = [8, 16], strides = [1, 1]} : vector<8x128xf32> to vector<8x16xf32>
    %362 = vector.extract_strided_slice %266 {offsets = [0, 5], sizes = [8, 1], strides = [1, 1]} : vector<8x8xf32> to vector<8x1xf32>
    %363 = vector.broadcast %362 : vector<8x1xf32> to vector<8x16xf32>
    %364 = arith.mulf %361, %363 : vector<8x16xf32>
    %cst_82 = arith.constant dense<0.000000e+00> : vector<8x8xf32>
    %365 = tpu.matmul %360, %364, %cst_82 {dimension_numbers = #tpu.dot_dimension_numbers<[1], [1], [0], [0], [0, 0, 1, 0], [], []>} : vector<8x16xf32>, vector<8x16xf32>, vector<8x8xf32> -> vector<8x8xf32>
    %366 = math.exp %365 : vector<8x8xf32>
    %cst_83 = arith.constant dense<0.000000e+00> : vector<8xf32>
    %367 = vector.multi_reduction <add>, %366, %cst_83 [1] : vector<8x8xf32> to vector<8xf32>
    %368 = vector.shape_cast %367 : vector<8xf32> to vector<8x1xf32>
    %369 = tpu.reciprocal %368 {approx = true} : vector<8x1xf32> -> vector<8x1xf32>
    %370 = vector.broadcast %369 : vector<8x1xf32> to vector<8x8xf32>
    %371 = arith.mulf %366, %370 : vector<8x8xf32>
    %372 = vector.extract_strided_slice %251 {offsets = [0, 80], sizes = [8, 16], strides = [1, 1]} : vector<8x128xf32> to vector<8x16xf32>
    %cst_84 = arith.constant dense<0.000000e+00> : vector<8x16xf32>
    %373 = tpu.matmul %371, %372, %cst_84 {dimension_numbers = #tpu.dot_dimension_numbers<[1], [0], [0], [1], [0, 0, 1, 1], [], []>} : vector<8x8xf32>, vector<8x16xf32>, vector<8x16xf32> -> vector<8x16xf32>
    %c0_85 = arith.constant 0 : index
    %c80 = arith.constant 80 : index
    %374 = vector.load %arg21[%c0_85, %c80] : memref<8x128xf32, #tpu.memory_space<vmem>>, vector<8x16xf32>
    tpu.vector_store %arg21[%c0_85, %c80], %373 {strides = array<i32>} : memref<8x128xf32, #tpu.memory_space<vmem>>, vector<8x16xf32>,
    %375 = vector.extract_strided_slice %241 {offsets = [0, 96], sizes = [8, 16], strides = [1, 1]} : vector<8x128xf32> to vector<8x16xf32>
    %376 = vector.extract_strided_slice %261 {offsets = [0, 6], sizes = [8, 1], strides = [1, 1]} : vector<8x8xf32> to vector<8x1xf32>
    %377 = vector.broadcast %376 : vector<8x1xf32> to vector<8x16xf32>
    %378 = arith.mulf %375, %377 : vector<8x16xf32>
    %379 = vector.extract_strided_slice %243 {offsets = [0, 96], sizes = [8, 16], strides = [1, 1]} : vector<8x128xf32> to vector<8x16xf32>
    %380 = vector.extract_strided_slice %266 {offsets = [0, 6], sizes = [8, 1], strides = [1, 1]} : vector<8x8xf32> to vector<8x1xf32>
    %381 = vector.broadcast %380 : vector<8x1xf32> to vector<8x16xf32>
    %382 = arith.mulf %379, %381 : vector<8x16xf32>
    %cst_86 = arith.constant dense<0.000000e+00> : vector<8x8xf32>
    %383 = tpu.matmul %378, %382, %cst_86 {dimension_numbers = #tpu.dot_dimension_numbers<[1], [1], [0], [0], [0, 0, 1, 0], [], []>} : vector<8x16xf32>, vector<8x16xf32>, vector<8x8xf32> -> vector<8x8xf32>
    %384 = math.exp %383 : vector<8x8xf32>
    %cst_87 = arith.constant dense<0.000000e+00> : vector<8xf32>
    %385 = vector.multi_reduction <add>, %384, %cst_87 [1] : vector<8x8xf32> to vector<8xf32>
    %386 = vector.shape_cast %385 : vector<8xf32> to vector<8x1xf32>
    %387 = tpu.reciprocal %386 {approx = true} : vector<8x1xf32> -> vector<8x1xf32>
    %388 = vector.broadcast %387 : vector<8x1xf32> to vector<8x8xf32>
    %389 = arith.mulf %384, %388 : vector<8x8xf32>
    %390 = vector.extract_strided_slice %251 {offsets = [0, 96], sizes = [8, 16], strides = [1, 1]} : vector<8x128xf32> to vector<8x16xf32>
    %cst_88 = arith.constant dense<0.000000e+00> : vector<8x16xf32>
    %391 = tpu.matmul %389, %390, %cst_88 {dimension_numbers = #tpu.dot_dimension_numbers<[1], [0], [0], [1], [0, 0, 1, 1], [], []>} : vector<8x8xf32>, vector<8x16xf32>, vector<8x16xf32> -> vector<8x16xf32>
    %c0_89 = arith.constant 0 : index
    %c96 = arith.constant 96 : index
    %392 = vector.load %arg21[%c0_89, %c96] : memref<8x128xf32, #tpu.memory_space<vmem>>, vector<8x16xf32>
    tpu.vector_store %arg21[%c0_89, %c96], %391 {strides = array<i32>} : memref<8x128xf32, #tpu.memory_space<vmem>>, vector<8x16xf32>,
    %393 = vector.extract_strided_slice %241 {offsets = [0, 112], sizes = [8, 16], strides = [1, 1]} : vector<8x128xf32> to vector<8x16xf32>
    %394 = vector.extract_strided_slice %261 {offsets = [0, 7], sizes = [8, 1], strides = [1, 1]} : vector<8x8xf32> to vector<8x1xf32>
    %395 = vector.broadcast %394 : vector<8x1xf32> to vector<8x16xf32>
    %396 = arith.mulf %393, %395 : vector<8x16xf32>
    %397 = vector.extract_strided_slice %243 {offsets = [0, 112], sizes = [8, 16], strides = [1, 1]} : vector<8x128xf32> to vector<8x16xf32>
    %398 = vector.extract_strided_slice %266 {offsets = [0, 7], sizes = [8, 1], strides = [1, 1]} : vector<8x8xf32> to vector<8x1xf32>
    %399 = vector.broadcast %398 : vector<8x1xf32> to vector<8x16xf32>
    %400 = arith.mulf %397, %399 : vector<8x16xf32>
    %cst_90 = arith.constant dense<0.000000e+00> : vector<8x8xf32>
    %401 = tpu.matmul %396, %400, %cst_90 {dimension_numbers = #tpu.dot_dimension_numbers<[1], [1], [0], [0], [0, 0, 1, 0], [], []>} : vector<8x16xf32>, vector<8x16xf32>, vector<8x8xf32> -> vector<8x8xf32>
    %402 = math.exp %401 : vector<8x8xf32>
    %cst_91 = arith.constant dense<0.000000e+00> : vector<8xf32>
    %403 = vector.multi_reduction <add>, %402, %cst_91 [1] : vector<8x8xf32> to vector<8xf32>
    %404 = vector.shape_cast %403 : vector<8xf32> to vector<8x1xf32>
    %405 = tpu.reciprocal %404 {approx = true} : vector<8x1xf32> -> vector<8x1xf32>
    %406 = vector.broadcast %405 : vector<8x1xf32> to vector<8x8xf32>
    %407 = arith.mulf %402, %406 : vector<8x8xf32>
    %408 = vector.extract_strided_slice %251 {offsets = [0, 112], sizes = [8, 16], strides = [1, 1]} : vector<8x128xf32> to vector<8x16xf32>
    %cst_92 = arith.constant dense<0.000000e+00> : vector<8x16xf32>
    %409 = tpu.matmul %407, %408, %cst_92 {dimension_numbers = #tpu.dot_dimension_numbers<[1], [0], [0], [1], [0, 0, 1, 1], [], []>} : vector<8x8xf32>, vector<8x16xf32>, vector<8x16xf32> -> vector<8x16xf32>
    %c0_93 = arith.constant 0 : index
    %c112 = arith.constant 112 : index
    %410 = vector.load %arg21[%c0_93, %c112] : memref<8x128xf32, #tpu.memory_space<vmem>>, vector<8x16xf32>
    tpu.vector_store %arg21[%c0_93, %c112], %409 {strides = array<i32>} : memref<8x128xf32, #tpu.memory_space<vmem>>, vector<8x16xf32>,
    %c0_94 = arith.constant 0 : index
    %c0_95 = arith.constant 0 : index
    %411 = vector.load %arg18[%c0_94, %c0_95] : memref<8x8xf32, #tpu.memory_space<vmem>>, vector<8x8xf32>
    %c0_96 = arith.constant 0 : index
    %c0_97 = arith.constant 0 : index
    %412 = vector.load %arg21[%c0_96, %c0_97] : memref<8x128xf32, #tpu.memory_space<vmem>>, vector<8x128xf32>
    %cst_98 = arith.constant dense<0.000000e+00> : vector<8x128xf32>
    %413 = tpu.matmul %411, %412, %cst_98 {dimension_numbers = #tpu.dot_dimension_numbers<[1], [0], [0], [1], [0, 0, 1, 1], [], []>} : vector<8x8xf32>, vector<8x128xf32>, vector<8x128xf32> -> vector<8x128xf32>
    %c0_99 = arith.constant 0 : index
    %c0_100 = arith.constant 0 : index
    %414 = vector.load %arg19[%c0_99, %c0_100] : memref<8x1xf32, #tpu.memory_space<vmem>>, vector<8x1xf32>
    %415 = vector.broadcast %414 : vector<8x1xf32> to vector<8x128xf32>
    %416 = arith.addf %413, %415 : vector<8x128xf32>
    %417 = arith.addf %416, %1 : vector<8x128xf32>
    %c0_101 = arith.constant 0 : index
    %c0_102 = arith.constant 0 : index
    %c0_103 = arith.constant 0 : index
    %418 = vector.load %arg20[%c0_101, %c0_102, %c0_103] : memref<1x8x128xf32, #tpu.memory_space<vmem>>, vector<1x8x128xf32>
    %419 = vector.shape_cast %418 : vector<1x8x128xf32> to vector<8x128xf32>
    %420 = vector.shape_cast %417 : vector<8x128xf32> to vector<1x8x128xf32>
    tpu.vector_store %arg20[%c0_101, %c0_102, %c0_103], %420 {strides = array<i32>} : memref<1x8x128xf32, #tpu.memory_space<vmem>>, vector<1x8x128xf32>,
    return
  }
  func.func @transform_0(%arg0: i32) -> i32 {
    %c0_i32 = arith.constant 0 : i32
    %c0_i32_0 = arith.constant 0 : i32
    return %c0_i32 : i32
  }
  func.func @transform_1(%arg0: i32) -> (i32, i32, i32) {
    %c0_i32 = arith.constant 0 : i32
    %c0_i32_0 = arith.constant 0 : i32
    %c0_i32_1 = arith.constant 0 : i32
    return %arg0, %c0_i32, %c0_i32_0 : i32, i32, i32
  }
  func.func @transform_2(%arg0: i32) -> (i32, i32, i32) {
    %c0_i32 = arith.constant 0 : i32
    %c0_i32_0 = arith.constant 0 : i32
    %c0_i32_1 = arith.constant 0 : i32
    return %arg0, %c0_i32, %c0_i32_0 : i32, i32, i32
  }
  func.func @transform_3(%arg0: i32) -> (i32, i32) {
    %c0_i32 = arith.constant 0 : i32
    %c0_i32_0 = arith.constant 0 : i32
    %c0_i32_1 = arith.constant 0 : i32
    return %c0_i32, %c0_i32_0 : i32, i32
  }
  func.func @transform_4(%arg0: i32) -> (i32, i32) {
    %c0_i32 = arith.constant 0 : i32
    %c0_i32_0 = arith.constant 0 : i32
    %c0_i32_1 = arith.constant 0 : i32
    return %c0_i32, %c0_i32_0 : i32, i32
  }
  func.func @transform_5(%arg0: i32) -> (i32, i32) {
    %c0_i32 = arith.constant 0 : i32
    %c0_i32_0 = arith.constant 0 : i32
    %c0_i32_1 = arith.constant 0 : i32
    return %c0_i32, %c0_i32_0 : i32, i32
  }
  func.func @transform_6(%arg0: i32) -> (i32, i32) {
    %c0_i32 = arith.constant 0 : i32
    %c0_i32_0 = arith.constant 0 : i32
    %c0_i32_1 = arith.constant 0 : i32
    return %c0_i32, %c0_i32_0 : i32, i32
  }
  func.func @transform_7(%arg0: i32) -> (i32, i32) {
    %c0_i32 = arith.constant 0 : i32
    %c0_i32_0 = arith.constant 0 : i32
    %c0_i32_1 = arith.constant 0 : i32
    return %c0_i32, %c0_i32_0 : i32, i32
  }
  func.func @transform_8(%arg0: i32) -> (i32, i32) {
    %c0_i32 = arith.constant 0 : i32
    %c0_i32_0 = arith.constant 0 : i32
    %c0_i32_1 = arith.constant 0 : i32
    return %c0_i32, %c0_i32_0 : i32, i32
  }
  func.func @transform_9(%arg0: i32) -> (i32, i32) {
    %c0_i32 = arith.constant 0 : i32
    %c0_i32_0 = arith.constant 0 : i32
    %c0_i32_1 = arith.constant 0 : i32
    return %c0_i32, %c0_i32_0 : i32, i32
  }
  func.func @transform_10(%arg0: i32) -> (i32, i32) {
    %c0_i32 = arith.constant 0 : i32
    %c0_i32_0 = arith.constant 0 : i32
    %c0_i32_1 = arith.constant 0 : i32
    return %c0_i32, %c0_i32_0 : i32, i32
  }
  func.func @transform_11(%arg0: i32) -> (i32, i32) {
    %c0_i32 = arith.constant 0 : i32
    %c0_i32_0 = arith.constant 0 : i32
    %c0_i32_1 = arith.constant 0 : i32
    return %c0_i32, %c0_i32_0 : i32, i32
  }
  func.func @transform_12(%arg0: i32) -> (i32, i32) {
    %c0_i32 = arith.constant 0 : i32
    %c0_i32_0 = arith.constant 0 : i32
    %c0_i32_1 = arith.constant 0 : i32
    return %c0_i32, %c0_i32_0 : i32, i32
  }
  func.func @transform_13(%arg0: i32) -> (i32, i32) {
    %c0_i32 = arith.constant 0 : i32
    %c0_i32_0 = arith.constant 0 : i32
    %c0_i32_1 = arith.constant 0 : i32
    return %c0_i32, %c0_i32_0 : i32, i32
  }
  func.func @transform_14(%arg0: i32) -> (i32, i32) {
    %c0_i32 = arith.constant 0 : i32
    %c0_i32_0 = arith.constant 0 : i32
    %c0_i32_1 = arith.constant 0 : i32
    return %c0_i32, %c0_i32_0 : i32, i32
  }
  func.func @transform_15(%arg0: i32) -> (i32, i32) {
    %c0_i32 = arith.constant 0 : i32
    %c0_i32_0 = arith.constant 0 : i32
    %c0_i32_1 = arith.constant 0 : i32
    return %c0_i32, %c0_i32_0 : i32, i32
  }
  func.func @transform_16(%arg0: i32) -> (i32, i32) {
    %c0_i32 = arith.constant 0 : i32
    %c0_i32_0 = arith.constant 0 : i32
    %c0_i32_1 = arith.constant 0 : i32
    return %c0_i32, %c0_i32_0 : i32, i32
  }
  func.func @transform_17(%arg0: i32) -> (i32, i32) {
    %c0_i32 = arith.constant 0 : i32
    %c0_i32_0 = arith.constant 0 : i32
    %c0_i32_1 = arith.constant 0 : i32
    return %c0_i32, %c0_i32_0 : i32, i32
  }
  func.func @transform_18(%arg0: i32) -> (i32, i32) {
    %c0_i32 = arith.constant 0 : i32
    %c0_i32_0 = arith.constant 0 : i32
    %c0_i32_1 = arith.constant 0 : i32
    return %c0_i32, %c0_i32_0 : i32, i32
  }
  func.func @transform_19(%arg0: i32) -> (i32, i32, i32) {
    %c0_i32 = arith.constant 0 : i32
    %c0_i32_0 = arith.constant 0 : i32
    %c0_i32_1 = arith.constant 0 : i32
    return %arg0, %c0_i32, %c0_i32_0 : i32, i32, i32
  }
}

</mosaic_0001>

<bundles_post_ra>
// kernel: tile.9
= control target key start
LH: loop header
LB: loop body
LE: loop exit
PB: predicated region body
PF: predicated region fallthrough
CT: control target
= control target key end

     0   :  { %vm47_vm0 = vcmask 1047556   ;;  %vm49_vm1 = vcmask 523264   ;;  %vm64_vm2 = vcmask 1048064   ;;  %s141_s0 = inlined_call_operand.vmem [shape: f32[9,2,64], index: 0, kind: input, shape index: {}]   ;;  %s142_s1 = inlined_call_operand.vmem [shape: f32[9,128], index: 1, kind: output, shape index: {}]  }
   0x1   :  { %v81_v0 = vld [vmem:[%s141_s0 + $0xe] sm:$0x3]  ;;  %v82_v1 = vld [vmem:[%s141_s0 + $0xc] sm:$0x3]  ;;  %v83_v2 = vld [vmem:[%s141_s0 + $0xa] sm:$0x3] }
   0x2   :  { %13 = vst [vmem:[#allocation0 + $0x38] sm:$0x3] %v81_v0  ;;  %18 = vst [vmem:[#allocation0 + $0x30] sm:$0x3] %v82_v1  ;;  %v84_v3 = vld [vmem:[%s141_s0 + $0x8] sm:$0x3] }
   0x3   :  { %23 = vst [vmem:[#allocation0 + $0x28] sm:$0x3] %v83_v2  ;;  %v85_v4 = vld [vmem:[%s141_s0 + $0x6] sm:$0x3]  ;;  %v86_v5 = vld [vmem:[%s141_s0 + $0x4] sm:$0x3] }
   0x4   :  { %28 = vst [vmem:[#allocation0 + $0x20] sm:$0x3] %v84_v3  ;;  %33 = vst [vmem:[#allocation0 + $0x18] sm:$0x3] %v85_v4  ;;  %v87_v6 = vld [vmem:[%s141_s0 + $0x2] sm:$0x3] }
   0x5   :  { %38 = vst [vmem:[#allocation0 + $0x10] sm:$0x3] %v86_v5  ;;  %v43_v7 = vld [vmem:[%s141_s0] sm:$0x3]  ;;  %42 = vst [vmem:[#allocation0 + $0x8] sm:$0x3] %v87_v6 }
   0x6   :  { %44 = vst [vmem:[#allocation0] sm:$0x3] %v43_v7  ;;  %v80_v8 = vld [vmem:[%s141_s0 + $0x10] sm:$0x3]  ;;  %s91_s0 = smov 64  }
   0x7   :  { %8 = vst [vmem:[#allocation0 + $0x40] sm:$0x3] %v80_v8 }
   0xb   :  { %v59_v9 = vld [vmem:[#allocation0 + $0x1] ss:$8 sm:$0xf0]   ;;  %v46_v10 = vld [vmem:[#allocation0] ss:$8 sm:$0xf0]  }
   0xd   :  { %v45_v11 = vld [vmem:[#allocation0] ss:$8 sm:$0xf]   ;;  %v57_v12 = vld [vmem:[#allocation0 + $0x1] ss:$8 sm:$0xf]  }
   0xe   :  { %v61_v13 = vsel %vm47_vm0, %v59_v9, %v57_v12  ;;  %v48_v14 = vsel %vm47_vm0, %v46_v10, %v45_v11  ;;  %v52_v15 = vld [vmem:[#allocation0 + $0x40] sm:$0x1]   ;;  %v67_v16 = vld [vmem:[#allocation0 + $0x41] sm:$0x1]  }
   0xf   :  { %62 = vrot.lane.b32.xlu0 %v61_v13, %s91_s0  ;;  %50 = vst.msk [vmem:[%s142_s1] sm:$0xff] %vm49_vm1, %v48_v14   ;;  %88 = vst.msk [vmem:[%s142_s1 + $0x8] sm:$0x1] %vm49_vm1, %v52_v15  }
  0x13   :  { %68 = vrot.lane.b32.xlu0 %v67_v16, %s91_s0 }
  0x81   :  { %v63_v17 = vpop.permute.xlu0 %62  }
  0x82   :  { %65 = vst.msk [vmem:[%s142_s1] sm:$0xff] %vm64_vm2, %v63_v17  }
  0x85   :  { %v69_v18 = vpop.permute.xlu0 %68  }
  0x86   :  { %89 = vst.msk [vmem:[%s142_s1 + $0x8] sm:$0x1] %vm64_vm2, %v69_v18  }

// kernel: atten_forward.1
= control target key start
LH: loop header
LB: loop body
LE: loop exit
PB: predicated region body
PF: predicated region fallthrough
CT: control target
= control target key end

     0   :  { %s3555_s0 = inlined_call_operand.vmem [shape: f32[2], index: 0, kind: input, shape index: {}]   ;;  %s3556_s1 = inlined_call_operand.vmem [shape: f32[1,8,128], index: 1, kind: input, shape index: {}]   ;;  %s3557_s2 = inlined_call_operand.vmem [shape: f32[1,8,128], index: 2, kind: input, shape index: {}]   ;;  %s3558_s3 = inlined_call_operand.vmem [shape: f32[8,1], index: 3, kind: input, shape index: {}]   ;;  %s3559_s4 = inlined_call_operand.vmem [shape: f32[8,1], index: 4, kind: input, shape index: {}]   ;;  %s3560_s5 = inlined_call_operand.vmem [shape: f32[8,1], index: 5, kind: input, shape index: {}]   ;;  %s3561_s6 = inlined_call_operand.vmem [shape: f32[8,1], index: 6, kind: input, shape index: {}]   ;;  %s3562_s7 = inlined_call_operand.vmem [shape: f32[16,8], index: 7, kind: input, shape index: {}]   ;;  %s3563_s8 = inlined_call_operand.vmem [shape: f32[16,1], index: 8, kind: input, shape index: {}]   ;;  %s3564_s9 = inlined_call_operand.vmem [shape: f32[16,9], index: 9, kind: input, shape index: {}]   ;;  %s3565_s10 = inlined_call_operand.vmem [shape: f32[16,1], index: 10, kind: input, shape index: {}]   ;;  %s3566_s11 = inlined_call_operand.vmem [shape: f32[16,8], index: 11, kind: input, shape index: {}]   ;;  %s3567_s12 = inlined_call_operand.vmem [shape: f32[16,1], index: 12, kind: input, shape index: {}]   ;;  %s3568_s13 = inlined_call_operand.vmem [shape: f32[16,9], index: 13, kind: input, shape index: {}]   ;;  %s3569_s14 = inlined_call_operand.vmem [shape: f32[16,1], index: 14, kind: input, shape index: {}]   ;;  %s3570_s15 = inlined_call_operand.vmem [shape: f32[9,128], index: 15, kind: input, shape index: {}]   ;;  %s3571_s16 = inlined_call_operand.vmem [shape: f32[128,8], index: 16, kind: input, shape index: {}]   ;;  %s3572_s17 = inlined_call_operand.vmem [shape: f32[8,8], index: 17, kind: input, shape index: {}]   ;;  %s3573_s18 = inlined_call_operand.vmem [shape: f32[8,1], index: 18, kind: input, shape index: {}]   ;;  %s3574_s19 = inlined_call_operand.vmem [shape: f32[1,8,128], index: 19, kind: output, shape index: {}]  }
   0x1   :  { %3576 = sst [smem:[#allocation6_spill]] %s3555_s0 }
   0x2   :  { %3577 = sst [smem:[#allocation7_spill]] %s3556_s1 }
   0x3   :  { %3578 = sst [smem:[#allocation8_spill]] %s3557_s2 }
   0x4   :  { %3579 = sst [smem:[#allocation9_spill]] %s3558_s3 }
   0x5   :  { %24 = vsyncpa [#allocation4], 0  ;;  %s3580_s20 = sld [smem:[#allocation6_spill]] }
   0xb   :  { %s31_s21 = sshll.u32 %s3580_s20, 4  ;;  %s32_s21 = int_to_ptr.vmem [resolvable:$true] %s31_s21 }
   0xc   :  { %s2852_s1 = scalar_lea.vmem %s32_s21, 16  ;;  %p2857_p1 = scmp.lt.s32.totalorder %s32_s21, %s32_s21 }
   0xd   :  { %p2853_p0 = scmp.ne.s32.totalorder %s32_s21, %s2852_s1  ;;  %p2858_p2 = scmp.lt.s32.totalorder %s2852_s1, %s2852_s1 }
   0xf   :  { %p2859_p3 = por %p2858_p2, %p2857_p1 }
  0x11   :  { %p2860_p4 = pnand %p2859_p3, %p2853_p0 }
  0x13   :  { %2863 = shalt.err (!%p2860_p4)
}
  0x14   :  { %s2866_s22 = smov [#allocation3]  }
  0x15   :  { %34 = dma.vmem_to_smem %s32_s21, 16, %s2866_s22, [#allocation4]  }
  0x16   :  { %2864 = dma.done.wait [#allocation4], 16  }
  0x17   :  { %2865 = vsyncadd [#allocation4], 4294967280 }
  0x18   :  { %74 = sfence }
  0x19   :  { %v434_v0 = vld [vmem:[%s3560_s5] sm:$0xff]  ;;  %s3581_s3 = sld [smem:[#allocation9_spill]]  ;;  %v2867_v2 = vmov 0   ;;  %vm127_vm0 = vcmask 64512   ;;  %v2868_v10 = vmov 1   ;;  %v2869_v11 = vmov 2  }
  0x1a   :  { %2761 = vset.pattern.permute.xlu1 %v2867_v2  ;;  %2760 = vset.pattern.permute.xlu0 %v2867_v2  ;;  %v441_v3 = vld [vmem:[%s3561_s6] sm:$0xff]  ;;  %v2870_v13 = vmov 3   ;;  %v2871_v14 = vmov 5   ;;  %v2872_v15 = vmov 4   ;;  %v2873_v16 = vmov 7   ;;  %s3582_s26 = sld [smem:[#allocation7_spill]] }
  0x1b   :  { %437 = vperm.xlu0 %2760, %v434_v0   ;;  %v106_v4 = vld [vmem:[%s3559_s4] sm:$0xff]  ;;  %v2874_v18 = vmov 8   ;;  %v2875_v19 = vmov 6   ;;  %s3583_s29 = sld [smem:[#allocation8_spill]]  ;;  %s2877_s25 = smov 8   ;;  %vm2884_vm1 = vmmov 0  }
  0x1c   :  { %v450_v5 = vld [vmem:[%s3567_s12] sm:$0xff]  ;;  %s2879_s0 = smov 7   ;;  %s2883_s24 = smov 121   ;;  %vm914_vm6 = vcmask 130048   ;;  %vm1250_vm7 = vcmask 261248   ;;  %vm1429_vm8 = vcmask 392448  }
  0x1d   :  { %v115_v6 = vld [vmem:[%s3563_s8] sm:$0xff]  ;;  %s2888_s20 = smov 96   ;;  %s2889_s21 = smov 80   ;;  %vm1608_vm9 = vcmask 523648   ;;  %vm1787_vm10 = vcmask 654848   ;;  %vm1966_vm11 = vcmask 786048  }
  0x1e   :  { %v113_v7 = vld [vmem:[%s3562_s7] sm:$0xff]  ;;  %s2890_s1 = smov 64   ;;  %s2891_s6 = smov 48   ;;  %vm2145_vm12 = vcmask 917248   ;;  %vm2324_vm13 = vcmask 1048448  }
  0x1f   :  { %v99_v1 = vld [vmem:[%s3581_s3] sm:$0xff]  ;;  %444 = vperm.xlu0 %2760, %v441_v3   ;;  %2521 = vmatprep.mubr.msk.f32.mxu0 %vm127_vm0, %v113_v7  ;;  %s2878_s3 = smov 9   ;;  %s2892_s22 = smov 32  }
  0x20   :  { %102 = vperm.xlu1 %2761, %v99_v1   ;;  %v448_v8 = vld [vmem:[%s3566_s11] sm:$0xff]  ;;  %s2893_s4 = smov 16  }
  0x21   :  { %2526 = vmatprep.mubr.msk.f32.mxu1 %vm127_vm0, %v448_v8  ;;  %v543_v9 = vld [vmem:[%s3568_s13] sm:$0xff] }
  0x22   :  { %v209_v12 = vld [vmem:[%s3564_s9] sm:$0xff] }
  0x23   :  { %454 = vperm.xlu0 %2760, %v450_v5   ;;  %v75_v17 = vld [vmem:[%s3582_s26] sm:$0xff]  ;;  %v114_v5 = vld [vmem:[%s3562_s7 + $0x8] sm:$0xff]  ;;  %s2880_s7 = smov 1  }
  0x24   :  { %109 = vperm.xlu1 %2761, %v106_v4   ;;  %v76_v20 = vld [vmem:[%s3583_s29] sm:$0xff]  ;;  %v79_v21 = vrot.slane %v75_v17, 4  ;;  %s2882_s29 = smov 120  }
  0x25   :  { %v415_v22 = vrot.slane %v76_v20, 4  ;;  %v703_v24 = vld [vmem:[%s3569_s14] sm:$0xff] }
  0x26   :  { %v80_v23 = vadd.f32 %v79_v21, %v75_v17  ;;  %v724_v8 = vld [vmem:[%s3571_s16] sm:$0xff] }
  0x27   :  { %2763 = vset.pattern.permute.xlu0 %v2869_v11  ;;  %v416_v25 = vadd.f32 %v415_v22, %v76_v20 }
  0x28   :  { %119 = vperm.xlu1 %2761, %v115_v6   ;;  %590 = vperm.xlu0 %2763, %v543_v9   ;;  %v81_v26 = vrot.slane %v80_v23, 2  ;;  %v449_v6 = vld [vmem:[%s3566_s11 + $0x8] sm:$0xff]  ;;  %s2881_s11 = smov 127  }
  0x29   :  { %v417_v27 = vrot.slane %v416_v25, 2 }
  0x2a   :  { %v82_v28 = vadd.f32 %v81_v26, %v80_v23  ;;  %v2876_v23 = vmov 0.0|0.0   ;;  %v727_v26 = vld [vmem:[%s3571_s16 + $0x18] sm:$0xff] }
  0x2b   :  { %v418_v29 = vadd.f32 %v417_v27, %v416_v25  ;;  %v726_v25 = vld [vmem:[%s3571_s16 + $0x10] sm:$0xff] }
  0x2c   :  { %2762 = vset.pattern.permute.xlu1 %v2868_v10  ;;  %2766 = vset.pattern.permute.xlu0 %v2870_v13  ;;  %v83_v30 = vrot.slane %v82_v28, 1  ;;  %v2688_v27 = vpack.c.bf16 %v727_v26, %v726_v25 }
  0x2d   :  { %572 = vperm.xlu1 %2762, %v543_v9   ;;  %608 = vperm.xlu0 %2766, %v543_v9   ;;  %v419_v31 = vrot.slane %v418_v29, 1 }
  0x2e   :  { %v84_v32 = vadd.f32 %v83_v30, %v82_v28  ;;  %v728_v30 = vld [vmem:[%s3571_s16 + $0x20] sm:$0xff] }
  0x2f   :  { %v420_v33 = vadd.f32 %v419_v31, %v418_v29  ;;  %v729_v31 = vld [vmem:[%s3571_s16 + $0x28] sm:$0xff] }
  0x30   :  { %v86_v34 = vmul.f32 0.125, %v84_v32  ;;  %v2691_v32 = vpack.c.bf16 %v729_v31, %v728_v30 }
  0x31   :  { %2764 = vset.pattern.permute.xlu1 %v2867_v2  ;;  %290 = vperm.xlu0 %2766, %v209_v12   ;;  %v421_v35 = vmul.f32 0.125, %v420_v33  ;;  %v730_v33 = vld [vmem:[%s3571_s16 + $0x30] sm:$0xff] }
  0x32   :  { %223 = vperm.xlu1 %2764, %v209_v12   ;;  %v87_v36 = vsub.f32 %v75_v17, %v86_v34  ;;  %v731_v34 = vld [vmem:[%s3571_s16 + $0x38] sm:$0xff] }
  0x33   :  { %v422_v37 = vsub.f32 %v76_v20, %v421_v35  ;;  %v2694_v35 = vpack.c.bf16 %v731_v34, %v730_v33 }
  0x34   :  { %v88_v38 = vmul.f32 %v87_v36, %v87_v36 }
  0x35   :  { %2769 = vset.pattern.permute.xlu0 %v2871_v14  ;;  %v423_v39 = vmul.f32 %v422_v37, %v422_v37 }
  0x36   :  { %2765 = vset.pattern.permute.xlu1 %v2868_v10  ;;  %638 = vperm.xlu0 %2769, %v543_v9   ;;  %v89_v40 = vrot.slane %v88_v38, 4 }
  0x37   :  { %246 = vperm.xlu1 %2765, %v209_v12   ;;  %v424_v41 = vrot.slane %v423_v39, 4 }
  0x38   :  { %v90_v42 = vadd.f32 %v89_v40, %v88_v38  ;;  %v735_v40 = vld [vmem:[%s3571_s16 + $0x58] sm:$0xff] }
  0x39   :  { %v425_v43 = vadd.f32 %v424_v41, %v423_v39  ;;  %v734_v39 = vld [vmem:[%s3571_s16 + $0x50] sm:$0xff] }
  0x3a   :  { %324 = vperm.xlu0 %2769, %v209_v12   ;;  %v91_v44 = vrot.slane %v90_v42, 2  ;;  %v2700_v41 = vpack.c.bf16 %v735_v40, %v734_v39 }
  0x3b   :  { %2767 = vset.pattern.permute.xlu1 %v2869_v11  ;;  %v426_v45 = vrot.slane %v425_v43, 2 }
  0x3c   :  { %268 = vperm.xlu1 %2767, %v209_v12   ;;  %v92_v46 = vadd.f32 %v91_v44, %v90_v42  ;;  %v401_v42 = vld [vmem:[%s3565_s10] sm:$0xff]  ;;  %v737_v44 = vld [vmem:[%s3571_s16 + $0x68] sm:$0xff] }
  0x3d   :  { %v427_v47 = vadd.f32 %v426_v45, %v425_v43  ;;  %v736_v43 = vld [vmem:[%s3571_s16 + $0x60] sm:$0xff] }
  0x3e   :  { %2771 = vset.pattern.permute.xlu0 %v2873_v16  ;;  %v93_v48 = vrot.slane %v92_v46, 1  ;;  %v2703_v45 = vpack.c.bf16 %v737_v44, %v736_v43 }
  0x3f   :  { %674 = vperm.xlu0 %2771, %v543_v9   ;;  %v428_v49 = vrot.slane %v427_v47, 1 }
  0x40   :  { %2768 = vset.pattern.permute.xlu1 %v2872_v15  ;;  %v94_v50 = vadd.f32 %v93_v48, %v92_v46  ;;  %v738_v46 = vld [vmem:[%s3571_s16 + $0x70] sm:$0xff] }
  0x41   :  { %620 = vperm.xlu1 %2768, %v543_v9   ;;  %v429_v51 = vadd.f32 %v428_v49, %v427_v47  ;;  %v739_v47 = vld [vmem:[%s3571_s16 + $0x78] sm:$0xff]  ;;  %v2885_v49 = vmov 0.0  }
  0x42   :  { %v95_v52 = vmul.f32 0.125, %v94_v50  ;;  %v2706_v48 = vpack.c.bf16 %v739_v47, %v738_v46 }
  0x43   :  { %2772 = vset.pattern.permute.xlu0 %v2874_v18  ;;  %v430_v53 = vmul.f32 0.125, %v429_v51 }
  0x44   :  { %692 = vperm.xlu0 %2772, %v543_v9   ;;  %v96_v54 = vadd.f32 1e-05, %v95_v52 }
  0x45   :  { %302 = vperm.xlu1 %2768, %v209_v12   ;;  %v431_v55 = vadd.f32 1e-05, %v430_v53 }
  0x46   :  { %2807 = vrsqrt.f32 %v96_v54 }
  0x47   :  { %2809 = vrsqrt.f32 %v431_v55 }
  0x48   :  { %2773 = vset.pattern.permute.xlu0 %v2867_v2 }
  0x49   :  { %2770 = vset.pattern.permute.xlu1 %v2875_v19  ;;  %553 = vperm.xlu0 %2773, %v543_v9  }
  0x4a   :  { %656 = vperm.xlu1 %2770, %v543_v9   ;;  %v725_v9 = vld [vmem:[%s3571_s16 + $0x8] sm:$0xff] }
  0x4b   :  { %v2685_v20 = vpack.c.bf16 %v725_v9, %v724_v8 }
  0x4d   :  { %707 = vperm.xlu0 %2773, %v703_v24  }
  0x4e   :  { %346 = vperm.xlu1 %2770, %v209_v12  }
  0x50   :  { %v2808_v56 = vpop.eup %2807 }
  0x51   :  { %v2810_v57 = vpop.eup %2809  ;;  %v98_v58 = vmul.f32 %v2808_v56, %v87_v36  ;;  %v732_v36 = vld [vmem:[%s3571_s16 + $0x40] sm:$0xff] }
  0x52   :  { %2774 = vset.pattern.permute.xlu1 %v2873_v16  ;;  %v433_v59 = vmul.f32 %v2810_v57, %v422_v37  ;;  %v733_v37 = vld [vmem:[%s3571_s16 + $0x48] sm:$0xff]  ;;  %s2886_s16 = smov 119  }
  0x53   :  { %368 = vperm.xlu1 %2774, %v209_v12   ;;  %v2697_v38 = vpack.c.bf16 %v733_v37, %v732_v36 }
  0x57   :  { %2775 = vset.pattern.permute.xlu1 %v2874_v18 }
  0x58   :  { %390 = vperm.xlu1 %2775, %v209_v12  }
  0x5c   :  { %2777 = vset.pattern.permute.xlu1 %v2868_v10 }
  0x9a   :  { %v438_v60 = vpop.permute.xlu0 %437 }
  0x9b   :  { %v440_v63 = vmul.f32 %v438_v60, %v433_v59 }
  0x9e   :  { %v445_v0 = vpop.permute.xlu0 %444 }
  0x9f   :  { %v103_v61 = vpop.permute.xlu1 %102  ;;  %v447_v4 = vadd.f32 %v445_v0, %v440_v63 }
  0xa0   :  { %v105_v62 = vmul.f32 %v103_v61, %v98_v58 }
  0xa1   :  { %2524 = vmatprep.subr.mxu1 %v447_v4 }
  0xa2   :  { %2525 = vmatpush3.msra.mxu1 %v447_v4  ;;  %v455_v7 = vpop.permute.xlu0 %454 }
  0xa3   :  { %v110_v1 = vpop.permute.xlu1 %109  ;;  %2527 = vmatmul.mubr.msk.f32.vlgmr.msra.gmra.mrb[0].mxu1 %vm127_vm0, %v449_v6  ;;  %2708 = vmatprep.subr.bf16.mxu1 %v2876_v23 }
  0xa4   :  { %v112_v3 = vadd.f32 %v110_v1, %v105_v62  ;;  %2710 = vmatpush3.bf16.msra.mxu1 %v2685_v20  ;;  %2596 = vmatprep.mubr.msk.f32.mxu1 %vm2884_vm1, %v2885_v49 }
  0xa5   :  { %2711 = vmatprep.subr.bf16.mxu1 %v2876_v23 }
  0xa6   :  { %2519 = vmatprep.subr.mxu0 %v112_v3 }
  0xa7   :  { %2520 = vmatpush3.msra.mxu0 %v112_v3  ;;  %v120_v28 = vpop.permute.xlu1 %119  ;;  %v591_v51 = vpop.permute.xlu0 %590 }
  0xa8   :  { %2522 = vmatmul.mubr.msk.f32.vlgmr.msra.gmra.mrb[0].mxu0 %vm127_vm0, %v114_v5  ;;  %2684 = vmatprep.subr.bf16.mxu0 %v2876_v23  ;;  %v215_v5 = vlaneseq }
  0xa9   :  { %2686 = vmatpush3.bf16.msra.mxu0 %v2685_v20  ;;  %2713 = vmatpush3.bf16.msra.mxu1 %v2688_v27 }
  0xaa   :  { %2687 = vmatprep.subr.bf16.mxu0 %v2876_v23  ;;  %2714 = vmatprep.subr.bf16.mxu1 %v2876_v23 }
  0xab   :  { %2561 = vmatprep.mubr.msk.f32.mxu0 %vm2884_vm1, %v2885_v49 }
  0xac   :  { %v573_v50 = vpop.permute.xlu1 %572  ;;  %v609_v53 = vpop.permute.xlu0 %608 }
  0xad   :  { %2689 = vmatpush3.bf16.msra.mxu0 %v2688_v27  ;;  %2716 = vmatpush3.bf16.msra.mxu1 %v2691_v32 }
  0xae   :  { %2690 = vmatprep.subr.bf16.mxu0 %v2876_v23  ;;  %2717 = vmatprep.subr.bf16.mxu1 %v2876_v23 }
  0xb0   :  { %v3177_v55 = vpop.permute.xlu0 %290 }
  0xb1   :  { %2692 = vmatpush3.bf16.msra.mxu0 %v2691_v32  ;;  %2719 = vmatpush3.bf16.msra.mxu1 %v2694_v35  ;;  %v224_v52 = vpop.permute.xlu1 %223 }
  0xb2   :  { %2693 = vmatprep.subr.bf16.mxu0 %v2876_v23  ;;  %2720 = vmatprep.subr.bf16.mxu1 %v2876_v23 }
  0xb5   :  { %2695 = vmatpush3.bf16.msra.mxu0 %v2694_v35  ;;  %2722 = vmatpush3.bf16.msra.mxu1 %v2697_v38  ;;  %v639_v57 = vpop.permute.xlu0 %638 }
  0xb6   :  { %2696 = vmatprep.subr.bf16.mxu0 %v2876_v23  ;;  %2723 = vmatprep.subr.bf16.mxu1 %v2876_v23  ;;  %v247_v54 = vpop.permute.xlu1 %246 }
  0xb9   :  { %2698 = vmatpush3.bf16.msra.mxu0 %v2697_v38  ;;  %2725 = vmatpush3.bf16.msra.mxu1 %v2700_v41  ;;  %v3181_v59 = vpop.permute.xlu0 %324 }
  0xba   :  { %2699 = vmatprep.subr.bf16.mxu0 %v2876_v23  ;;  %2726 = vmatprep.subr.bf16.mxu1 %v2876_v23 }
  0xbb   :  { %v3179_v56 = vpop.permute.xlu1 %268 }
  0xbd   :  { %2701 = vmatpush3.bf16.msra.mxu0 %v2700_v41  ;;  %2728 = vmatpush3.bf16.msra.mxu1 %v2703_v45 }
  0xbe   :  { %2702 = vmatprep.subr.bf16.mxu0 %v2876_v23  ;;  %2729 = vmatprep.subr.bf16.mxu1 %v2876_v23  ;;  %v3185_v62 = vpop.permute.xlu0 %674 }
  0xc0   :  { %v621_v58 = vpop.permute.xlu1 %620 }
  0xc1   :  { %2704 = vmatpush3.bf16.msra.mxu0 %v2703_v45  ;;  %2731 = vmatpush3.bf16.msra.mxu1 %v2706_v48 }
  0xc2   :  { %2705 = vmatprep.subr.bf16.mxu0 %v2876_v23  ;;  %2604 = vmatprep.subr.mxu1 %v2885_v49 }
  0xc3   :  { %v3189_v0 = vpop.permute.xlu0 %692 }
  0xc4   :  { %v3183_v60 = vpop.permute.xlu1 %302 }
  0xc5   :  { %2707 = vmatpush3.bf16.msra.mxu0 %v2706_v48 }
  0xc6   :  { %2599 = vmatprep.subr.mxu0 %v2885_v49 }
  0xc8   :  { %v554_v3 = vpop.permute.xlu0 %553 }
  0xc9   :  { %v657_v61 = vpop.permute.xlu1 %656 }
  0xcc   :  { %v3195_v6 = vpop.permute.xlu0 %707 }
  0xcd   :  { %v3187_v63 = vpop.permute.xlu1 %346 }
  0xd2   :  { %v3191_v1 = vpop.permute.xlu1 %368 }
  0xd7   :  { %v3193_v4 = vpop.permute.xlu1 %390 }
 0x176   :  { %v3071_v17 = vpop.f32.mrb[0].mxu1 }
 0x177   :  { %v534_v22 = vpop.f32.mrb[1].mxu1 }
 0x178   :  { %v3075_v24 = vadd.f32 %v534_v22, %v455_v7  ;;  %v216_v7 = vshrl.u32 %v215_v5, 7  ;;  %v77_v22 = vld [vmem:[%s3570_s15] sm:$0xff] }
 0x17a   :  { %565 = vrot.lane.b32.xlu0 %v3075_v24, %s2877_s25  ;;  %545 = vrot.lane.b32.xlu1 %v3075_v24, %s2878_s3  ;;  %v241_v20 = vsub.s32 1, %v216_v7  ;;  %v263_v25 = vsub.s32 2, %v216_v7  ;;  %v341_v46 = vsub.s32 6, %v216_v7 }
 0x17b   :  { %v3069_v12 = vpop.f32.mrb[0].mxu0 }
 0x17c   :  { %v200_v21 = vpop.f32.mrb[1].mxu0  ;;  %v3200_v26 = vrot.slane %v77_v22, %v241_v20  ;;  %v3204_v32 = vrot.slane %v77_v22, %v263_v25  ;;  %v363_v20 = vsub.s32 7, %v216_v7  ;;  %v3217_v25 = vrot.slane %v77_v22, %v341_v46 }
 0x17d   :  { %v3089_v29 = vadd.f32 %v200_v21, %v120_v28  ;;  %v217_v21 = vsub.s32 0, %v216_v7  ;;  %v285_v28 = vsub.s32 3, %v216_v7 }
 0x17e   :  { %583 = vrot.lane.b32.xlu1 %v3075_v24, %s2879_s0 }
 0x17f   :  { %211 = vrot.lane.b32.xlu0 %v3089_v29, %s2878_s3  ;;  %v3202_v27 = vrot.slane %v77_v22, %v217_v21  ;;  %v3208_v35 = vrot.slane %v77_v22, %v285_v28 }
 0x182   :  { %235 = vrot.lane.b32.xlu1 %v3089_v29, %s2877_s25 }
 0x183   :  { %257 = vrot.lane.b32.xlu0 %v3089_v29, %s2879_s0 }
 0x186   :  { %601 = vrot.lane.b32.xlu1 %v3075_v24, %s2880_s7 }
 0x187   :  { %313 = vrot.lane.b32.xlu0 %v3089_v29, %s2881_s11 }
 0x18a   :  { %279 = vrot.lane.b32.xlu1 %v3089_v29, %s2880_s7 }
 0x18b   :  { %667 = vrot.lane.b32.xlu0 %v3075_v24, %s2882_s29 }
 0x18e   :  { %631 = vrot.lane.b32.xlu1 %v3075_v24, %s2881_s11 }
 0x18f   :  { %405 = vperm.xlu0 %2773, %v401_v42   ;;  %v319_v42 = vsub.s32 5, %v216_v7 }
 0x192   :  { %649 = vrot.lane.b32.xlu1 %v3075_v24, %s2883_s24 }
 0x193   :  { %2776 = vset.pattern.permute.xlu0 %v2868_v10 }
 0x196   :  { %335 = vrot.lane.b32.xlu1 %v3089_v29, %s2883_s24 }
 0x19a   :  { %685 = vrot.lane.b32.xlu1 %v3075_v24, %s2886_s16 }
 0x19e   :  { %357 = vrot.lane.b32.xlu1 %v3089_v29, %s2882_s29 }
 0x1a2   :  { %379 = vrot.lane.b32.xlu1 %v3089_v29, %s2886_s16 }
 0x1ec   :  { %v546_v8 = vpop.permute.xlu1 %545  ;;  %v566_v9 = vpop.permute.xlu0 %565 }
 0x1ed   :  { %v569_v33 = vmul.f32 %v566_v9, %v3200_v26  ;;  %v549_v34 = vmul.f32 %v546_v8, %v3202_v27  ;;  %v3214_v8 = vrot.slane %v77_v22, %v319_v42 }
 0x1ef   :  { %v579_v39 = vmul.f32 %v573_v50, %v569_v33  ;;  %v561_v40 = vmul.f32 %v554_v3, %v549_v34 }
 0x1f0   :  { %v584_v23 = vpop.permute.xlu1 %583 }
 0x1f1   :  { %v212_v30 = vpop.permute.xlu0 %211  ;;  %v587_v37 = vmul.f32 %v584_v23, %v3204_v32  ;;  %v581_v47 = vadd.f32 %v579_v39, %v561_v40 }
 0x1f2   :  { %v219_v48 = vmul.f32 %v3202_v27, %v212_v30  ;;  %v627_v30 = vmul.f32 %v621_v58, %v3075_v24  ;;  %v3231_v24 = vld [vmem:[%s3570_s15 + $0x8] ss:$0 sm:$0xff]  ;;  %s2887_s15 = smov 112  }
 0x1f3   :  { %v597_v44 = vmul.f32 %v591_v51, %v587_v37 }
 0x1f4   :  { %v236_v31 = vpop.permute.xlu1 %235  ;;  %v231_v28 = vmul.f32 %v224_v52, %v219_v48 }
 0x1f5   :  { %v258_v38 = vpop.permute.xlu0 %257  ;;  %v243_v45 = vmul.f32 %v3200_v26, %v236_v31  ;;  %v599_v23 = vadd.f32 %v597_v44, %v581_v47 }
 0x1f6   :  { %v265_v51 = vmul.f32 %v3204_v32, %v258_v38 }
 0x1f7   :  { %v253_v50 = vmul.f32 %v247_v54, %v243_v45 }
 0x1f8   :  { %v602_v36 = vpop.permute.xlu1 %601  ;;  %v275_v39 = vmul.f32 %v3179_v56, %v265_v51 }
 0x1f9   :  { %v605_v41 = vmul.f32 %v602_v36, %v3208_v35  ;;  %v314_v9 = vpop.permute.xlu0 %313  ;;  %v255_v34 = vadd.f32 %v253_v50, %v231_v28  ;;  %v3222_v36 = vrot.slane %v77_v22, %v363_v20  ;;  %v309_v22 = vmul.f32 %v3183_v60, %v3089_v29 }
 0x1fb   :  { %v615_v5 = vmul.f32 %v609_v53, %v605_v41  ;;  %v277_v42 = vadd.f32 %v275_v39, %v255_v34 }
 0x1fc   :  { %v280_v43 = vpop.permute.xlu1 %279 }
 0x1fd   :  { %v617_v31 = vadd.f32 %v615_v5, %v599_v23  ;;  %v287_v33 = vmul.f32 %v3208_v35, %v280_v43  ;;  %v668_v54 = vpop.permute.xlu0 %667 }
 0x1fe   :  { %v671_v43 = vmul.f32 %v668_v54, %v3222_v36 }
 0x1ff   :  { %v297_v40 = vmul.f32 %v3177_v55, %v287_v33  ;;  %v629_v52 = vadd.f32 %v627_v30, %v617_v31  ;;  %v321_v55 = vmul.f32 %v3214_v8, %v314_v9 }
 0x200   :  { %v632_v21 = vpop.permute.xlu1 %631 }
 0x201   :  { %v635_v3 = vmul.f32 %v632_v21, %v3214_v8  ;;  %v331_v21 = vmul.f32 %v3181_v59, %v321_v55 }
 0x203   :  { %v645_v7 = vmul.f32 %v639_v57, %v635_v3  ;;  %v299_v57 = vadd.f32 %v297_v40, %v277_v42 }
 0x204   :  { %v650_v53 = vpop.permute.xlu1 %649 }
 0x205   :  { %v653_v37 = vmul.f32 %v650_v53, %v3217_v25  ;;  %v647_v44 = vadd.f32 %v645_v7, %v629_v52  ;;  %v311_v47 = vadd.f32 %v309_v22, %v299_v57 }
 0x207   :  { %v663_v41 = vmul.f32 %v657_v61, %v653_v37  ;;  %v681_v61 = vmul.f32 %v3185_v62, %v671_v43  ;;  %v333_v60 = vadd.f32 %v331_v21, %v311_v47 }
 0x208   :  { %v336_v38 = vpop.permute.xlu1 %335 }
 0x209   :  { %v665_v58 = vadd.f32 %v663_v41, %v647_v44  ;;  %v343_v45 = vmul.f32 %v3217_v25, %v336_v38 }
 0x20b   :  { %v683_v48 = vadd.f32 %v681_v61, %v665_v58  ;;  %v353_v23 = vmul.f32 %v3187_v63, %v343_v45 }
 0x20c   :  { %v686_v56 = vpop.permute.xlu1 %685 }
 0x20d   :  { %v689_v46 = vmul.f32 %v3231_v24, %v686_v56  ;;  %v355_v28 = vadd.f32 %v353_v23, %v333_v60 }
 0x20e   :  { %v406_v33 = vpop.permute.xlu0 %405 }
 0x20f   :  { %v699_v5 = vmul.f32 %v3189_v0, %v689_v46 }
 0x210   :  { %v358_v20 = vpop.permute.xlu1 %357 }
 0x211   :  { %v701_v50 = vadd.f32 %v699_v5, %v683_v48  ;;  %v365_v29 = vmul.f32 %v3222_v36, %v358_v20 }
 0x213   :  { %v3244_v9 = vadd.f32 %v3195_v6, %v701_v50  ;;  %v375_v62 = vmul.f32 %v3191_v1, %v365_v29 }
 0x214   :  { %v380_v3 = vpop.permute.xlu1 %379 }
 0x215   :  { %v387_v51 = vmul.f32 %v3231_v24, %v380_v3  ;;  %v811_v0 = vmul.f32 %v3244_v9, %v3244_v9  ;;  %v377_v31 = vadd.f32 %v375_v62, %v355_v28 }
 0x217   :  { %v397_v59 = vmul.f32 %v3193_v4, %v387_v51  ;;  %2597 = vmatmul.mubr.f32.vlgmr.msra.gmra.mrb[2].mxu1 %v811_v0 }
 0x218   :  { %2606 = vmatprep.mubr.msk.f32.mxu1 %vm2884_vm1, %v2885_v49 }
 0x219   :  { %v399_v63 = vadd.f32 %v397_v59, %v377_v31 }
 0x21b   :  { %v3253_v6 = vadd.f32 %v406_v33, %v399_v63 }
 0x21d   :  { %v740_v1 = vmul.f32 %v3253_v6, %v3253_v6 }
 0x21f   :  { %2562 = vmatmul.mubr.f32.vlgmr.msra.gmra.mrb[2].mxu0 %v740_v1 }
 0x220   :  { %2601 = vmatprep.mubr.msk.f32.mxu0 %vm2884_vm1, %v2885_v49 }
 0x2ea   :  { %v878_v30 = vpop.f32.mrb[2].mxu1 }
 0x2eb   :  { %2811 = vrsqrt.f32 %v878_v30  ;;  %v2598_v53 = vpop.f32.mrb[3].mxu1  ;;  %vm894_vm2 = vcmp.eq.f32.partialorder %v878_v30, inf  ;;  %v897_v54 = vand.u32 2147483648, %v878_v30  ;;  %vm896_vm3 = vcmp.eq.f32.partialorder %v878_v30, 0.0 }
 0x2f2   :  { %v807_v34 = vpop.f32.mrb[2].mxu0 }
 0x2f3   :  { %2813 = vrsqrt.f32 %v807_v34  ;;  %v2563_v4 = vpop.f32.mrb[3].mxu0  ;;  %vm884_vm4 = vcmp.eq.f32.partialorder %v807_v34, inf  ;;  %v887_v42 = vand.u32 2147483648, %v807_v34  ;;  %vm886_vm5 = vcmp.eq.f32.partialorder %v807_v34, 0.0 }
 0x2f5   :  { %v2812_v7 = vpop.eup %2811 }
 0x2f6   :  { %v893_v37 = vmul.f32 %v2812_v7, %v878_v30 }
 0x2f8   :  { %v895_v39 = vsel %vm894_vm2, %v878_v30, %v893_v37  ;;  %v451_v37 = vld [vmem:[%s3567_s12 + $0x8] sm:$0xff] }
 0x2f9   :  { %v898_v40 = vsel %vm896_vm3, %v897_v54, %v895_v39 }
 0x2fa   :  { %v899_v52 = vmax.f32 %v898_v40, 1e-12 }
 0x2fc   :  { %2815 = vrcp.f32 %v899_v52  ;;  %v3309_v52 = vld [vmem:[%s3564_s9 + $0x8] sm:$0xff] }
 0x2fd   :  { %v2814_v41 = vpop.eup %2813 }
 0x2fe   :  { %v883_v38 = vmul.f32 %v2814_v41, %v807_v34 }
 0x300   :  { %v885_v43 = vsel %vm884_vm4, %v807_v34, %v883_v38  ;;  %v116_v34 = vld [vmem:[%s3563_s8 + $0x8] sm:$0xff] }
 0x301   :  { %v888_v44 = vsel %vm886_vm5, %v887_v42, %v885_v43 }
 0x302   :  { %v889_v57 = vmax.f32 %v888_v44, 1e-12 }
 0x304   :  { %2817 = vrcp.f32 %v889_v57 }
 0x306   :  { %v2816_v58 = vpop.eup %2815 }
 0x307   :  { %1078 = vperm.xlu0 %2776, %v2816_v58  }
 0x30b   :  { %2779 = vset.pattern.permute.xlu0 %v2869_v11 }
 0x30e   :  { %v2818_v22 = vpop.eup %2817 }
 0x30f   :  { %1253 = vperm.xlu0 %2779, %v2818_v22   ;;  %1073 = vperm.xlu1 %2777, %v2818_v22  }
 0x313   :  { %2781 = vset.pattern.permute.xlu0 %v2872_v15  ;;  %2778 = vset.pattern.permute.xlu1 %v2869_v11 }
 0x314   :  { %1616 = vperm.xlu0 %2781, %v2816_v58   ;;  %1258 = vperm.xlu1 %2778, %v2816_v58  }
 0x318   :  { %2784 = vset.pattern.permute.xlu0 %v2871_v14  ;;  %2780 = vset.pattern.permute.xlu1 %v2870_v13 }
 0x319   :  { %1790 = vperm.xlu0 %2784, %v2818_v22   ;;  %1437 = vperm.xlu1 %2780, %v2816_v58  }
 0x31d   :  { %2786 = vset.pattern.permute.xlu0 %v2873_v16  ;;  %1432 = vperm.xlu1 %2780, %v2818_v22  }
 0x31e   :  { %2153 = vperm.xlu0 %2786, %v2816_v58  }
 0x321   :  { %2782 = vset.pattern.permute.xlu1 %v2872_v15 }
 0x322   :  { %2789 = vset.pattern.permute.xlu0 %v2867_v2  ;;  %1611 = vperm.xlu1 %2782, %v2818_v22  }
 0x323   :  { %904 = vperm.xlu0 %2789, %v2818_v22  }
 0x326   :  { %2783 = vset.pattern.permute.xlu1 %v2871_v14 }
 0x327   :  { %1795 = vperm.xlu1 %2783, %v2816_v58  }
 0x32b   :  { %2785 = vset.pattern.permute.xlu1 %v2875_v19 }
 0x32c   :  { %1974 = vperm.xlu1 %2785, %v2816_v58  }
 0x330   :  { %1969 = vperm.xlu1 %2785, %v2818_v22  }
 0x334   :  { %2787 = vset.pattern.permute.xlu1 %v2873_v16 }
 0x335   :  { %2148 = vperm.xlu1 %2787, %v2818_v22  }
 0x339   :  { %2788 = vset.pattern.permute.xlu1 %v2867_v2 }
 0x33a   :  { %910 = vperm.xlu1 %2788, %v2816_v58  }
 0x386   :  { %v1079_v56 = vpop.permute.xlu0 %1078 }
 0x387   :  { %v1081_v55 = vmul.f32 %v1079_v56, %v3244_v9 }
 0x389   :  { %1086 = vrot.lane.b32.xlu1 %v1081_v55, %s2887_s15 }
 0x38e   :  { %v1074_v61 = vpop.permute.xlu1 %1073  ;;  %v1254_v46 = vpop.permute.xlu0 %1253 }
 0x38f   :  { %v1076_v45 = vmul.f32 %v1074_v61, %v3253_v6  ;;  %v1256_v47 = vmul.f32 %v1254_v46, %v3253_v6 }
 0x391   :  { %1083 = vrot.lane.b32.xlu1 %v1076_v45, %s2887_s15 }
 0x393   :  { %v1259_v48 = vpop.permute.xlu1 %1258  ;;  %v1617_v23 = vpop.permute.xlu0 %1616 }
 0x394   :  { %v1261_v5 = vmul.f32 %v1259_v48, %v3244_v9  ;;  %v1619_v29 = vmul.f32 %v1617_v23, %v3244_v9 }
 0x395   :  { %1263 = vrot.lane.b32.xlu1 %v1256_v47, %s2888_s20 }
 0x396   :  { %1266 = vrot.lane.b32.xlu0 %v1261_v5, %s2888_s20 }
 0x398   :  { %v1438_v20 = vpop.permute.xlu1 %1437  ;;  %v1791_v28 = vpop.permute.xlu0 %1790 }
 0x399   :  { %v1440_v21 = vmul.f32 %v1438_v20, %v3244_v9  ;;  %v1793_v51 = vmul.f32 %v1791_v28, %v3253_v6 }
 0x39b   :  { %1445 = vrot.lane.b32.xlu0 %v1440_v21, %s2889_s21 }
 0x39c   :  { %v1433_v50 = vpop.permute.xlu1 %1432 }
 0x39d   :  { %v1435_v60 = vmul.f32 %v1433_v50, %v3253_v6  ;;  %v2154_v33 = vpop.permute.xlu0 %2153 }
 0x39e   :  { %v2156_v30 = vmul.f32 %v2154_v33, %v3244_v9 }
 0x39f   :  { %1624 = vrot.lane.b32.xlu0 %v1619_v29, %s2890_s1  ;;  %1442 = vrot.lane.b32.xlu1 %v1435_v60, %s2889_s21 }
 0x3a1   :  { %v1612_v62 = vpop.permute.xlu1 %1611 }
 0x3a2   :  { %v1614_v3 = vmul.f32 %v1612_v62, %v3253_v6  ;;  %v905_v39 = vpop.permute.xlu0 %904 }
 0x3a3   :  { %v907_v41 = vmul.f32 %v905_v39, %v3253_v6 }
 0x3a4   :  { %1621 = vrot.lane.b32.xlu1 %v1614_v3, %s2890_s1 }
 0x3a6   :  { %v1796_v0 = vpop.permute.xlu1 %1795 }
 0x3a7   :  { %v1798_v31 = vmul.f32 %v1796_v0, %v3244_v9 }
 0x3a8   :  { %1800 = vrot.lane.b32.xlu1 %v1793_v51, %s2891_s6 }
 0x3a9   :  { %1803 = vrot.lane.b32.xlu0 %v1798_v31, %s2891_s6 }
 0x3ab   :  { %v1975_v59 = vpop.permute.xlu1 %1974 }
 0x3ac   :  { %v1977_v63 = vmul.f32 %v1975_v59, %v3244_v9 }
 0x3ae   :  { %1982 = vrot.lane.b32.xlu0 %v1977_v63, %s2892_s22 }
 0x3af   :  { %v1970_v1 = vpop.permute.xlu1 %1969 }
 0x3b0   :  { %v1972_v53 = vmul.f32 %v1970_v1, %v3253_v6 }
 0x3b2   :  { %2161 = vrot.lane.b32.xlu0 %v2156_v30, %s2893_s4  ;;  %1979 = vrot.lane.b32.xlu1 %v1972_v53, %s2892_s22 }
 0x3b4   :  { %v2149_v4 = vpop.permute.xlu1 %2148 }
 0x3b5   :  { %v2151_v7 = vmul.f32 %v2149_v4, %v3253_v6 }
 0x3b6   :  { %124 = vperm.xlu0 %2789, %v116_v34  }
 0x3b7   :  { %2158 = vrot.lane.b32.xlu1 %v2151_v7, %s2893_s4 }
 0x3b9   :  { %v911_v54 = vpop.permute.xlu1 %910 }
 0x3ba   :  { %v913_v40 = vmul.f32 %v911_v54, %v3244_v9  ;;  %2791 = vset.pattern.permute.xlu0 %v2869_v11  ;;  %v3324_v9 = vld [vmem:[%s3568_s13 + $0x8] sm:$0xff] }
 0x3bb   :  { %459 = vperm.xlu1 %2788, %v451_v37   ;;  %272 = vperm.xlu0 %2791, %v3309_v52  }
 0x3bc   :  { %2600 = vmatpush3.xpose.msk.msra.mxu0 %vm914_vm6, %v913_v40 }
 0x3bd   :  { %2609 = vmatprep.subr.mxu0 %v2885_v49 }
 0x3bf   :  { %2602 = vmatmul.mubr.msk.f32.vlgmr.msra.gmra.mrb[4].mxu0 %vm914_vm6, %v907_v41  ;;  %2790 = vset.pattern.permute.xlu1 %v2868_v10 }
 0x3c0   :  { %2611 = vmatprep.mubr.msk.f32.mxu0 %vm2884_vm1, %v2885_v49  ;;  %250 = vperm.xlu1 %2790, %v3309_v52  }
 0x3c1   :  { %2794 = vset.pattern.permute.xlu0 %v2870_v13 }
 0x3c2   :  { %612 = vperm.xlu0 %2794, %v3324_v9  }
 0x3c4   :  { %576 = vperm.xlu1 %2790, %v3324_v9  }
 0x3c6   :  { %2795 = vset.pattern.permute.xlu0 %v2872_v15 }
 0x3c8   :  { %2792 = vset.pattern.permute.xlu1 %v2869_v11 }
 0x3c9   :  { %594 = vperm.xlu1 %2792, %v3324_v9  }
 0x3cd   :  { %2793 = vset.pattern.permute.xlu1 %v2870_v13 }
 0x3ce   :  { %294 = vperm.xlu1 %2793, %v3309_v52  }
 0x3d2   :  { %2796 = vset.pattern.permute.xlu1 %v2872_v15 }
 0x3fb   :  { %v1087_v10 = vpop.permute.xlu1 %1086 }
 0x3fc   :  { %2610 = vmatpush3.xpose.msk.msra.mxu0 %vm914_vm6, %v1087_v10 }
 0x3fd   :  { %2619 = vmatprep.subr.mxu0 %v2885_v49 }
 0x403   :  { %v1084_v6 = vpop.permute.xlu1 %1083 }
 0x404   :  { %2612 = vmatmul.mubr.msk.f32.vlgmr.msra.gmra.mrb[6].mxu0 %vm914_vm6, %v1084_v6 }
 0x405   :  { %2621 = vmatprep.mubr.msk.f32.mxu0 %vm2884_vm1, %v2885_v49 }
 0x407   :  { %v1264_v13 = vpop.permute.xlu1 %1263 }
 0x408   :  { %v1267_v11 = vpop.permute.xlu0 %1266 }
 0x409   :  { %2620 = vmatpush3.xpose.msk.msra.mxu0 %vm914_vm6, %v1267_v11 }
 0x40a   :  { %2629 = vmatprep.subr.mxu0 %v2885_v49 }
 0x40c   :  { %2622 = vmatmul.mubr.msk.f32.vlgmr.msra.gmra.mrb[8].mxu0 %vm914_vm6, %v1264_v13 }
 0x40d   :  { %v1446_v15 = vpop.permute.xlu0 %1445  ;;  %2631 = vmatprep.mubr.msk.f32.mxu0 %vm2884_vm1, %v2885_v49 }
 0x40e   :  { %2630 = vmatpush3.xpose.msk.msra.mxu0 %vm914_vm6, %v1446_v15 }
 0x40f   :  { %2639 = vmatprep.subr.mxu0 %v2885_v49 }
 0x411   :  { %v1625_v38 = vpop.permute.xlu0 %1624  ;;  %v1443_v42 = vpop.permute.xlu1 %1442 }
 0x412   :  { %2632 = vmatmul.mubr.msk.f32.vlgmr.msra.gmra.mrb[10].mxu0 %vm914_vm6, %v1443_v42 }
 0x413   :  { %2640 = vmatpush3.xpose.msk.msra.mxu0 %vm914_vm6, %v1625_v38  ;;  %2641 = vmatprep.mubr.msk.f32.mxu0 %vm2884_vm1, %v2885_v49 }
 0x414   :  { %2649 = vmatprep.subr.mxu0 %v2885_v49 }
 0x416   :  { %v1622_v43 = vpop.permute.xlu1 %1621 }
 0x417   :  { %2642 = vmatmul.mubr.msk.f32.vlgmr.msra.gmra.mrb[12].mxu0 %vm914_vm6, %v1622_v43 }
 0x418   :  { %2651 = vmatprep.mubr.msk.f32.mxu0 %vm2884_vm1, %v2885_v49 }
 0x41a   :  { %v1801_v57 = vpop.permute.xlu1 %1800 }
 0x41b   :  { %v1804_v44 = vpop.permute.xlu0 %1803 }
 0x41c   :  { %2650 = vmatpush3.xpose.msk.msra.mxu0 %vm914_vm6, %v1804_v44 }
 0x41d   :  { %2659 = vmatprep.subr.mxu0 %v2885_v49 }
 0x41f   :  { %2652 = vmatmul.mubr.msk.f32.vlgmr.msra.gmra.mrb[14].mxu0 %vm914_vm6, %v1801_v57 }
 0x420   :  { %v1983_v58 = vpop.permute.xlu0 %1982  ;;  %2661 = vmatprep.mubr.msk.f32.mxu0 %vm2884_vm1, %v2885_v49 }
 0x421   :  { %2660 = vmatpush3.xpose.msk.msra.mxu0 %vm914_vm6, %v1983_v58 }
 0x422   :  { %2669 = vmatprep.subr.mxu0 %v2885_v49 }
 0x424   :  { %v2162_v22 = vpop.permute.xlu0 %2161  ;;  %v1980_v56 = vpop.permute.xlu1 %1979 }
 0x425   :  { %2662 = vmatmul.mubr.msk.f32.vlgmr.msra.gmra.mrb[16].mxu0 %vm914_vm6, %v1980_v56 }
 0x426   :  { %2670 = vmatpush3.xpose.msk.msra.mxu0 %vm914_vm6, %v2162_v22  ;;  %2671 = vmatprep.mubr.msk.f32.mxu0 %vm2884_vm1, %v2885_v49 }
 0x427   :  { %2679 = vmatprep.subr.mxu0 %v2885_v49 }
 0x429   :  { %v2159_v55 = vpop.permute.xlu1 %2158 }
 0x42a   :  { %2672 = vmatmul.mubr.msk.f32.vlgmr.msra.gmra.mrb[18].mxu0 %vm914_vm6, %v2159_v55 }
 0x42b   :  { %2681 = vmatprep.mubr.msk.f32.mxu0 %vm2884_vm1, %v2885_v49 }
 0x435   :  { %v125_v61 = vpop.permute.xlu0 %124 }
 0x436   :  { %v3371_v45 = vadd.f32 %v3069_v12, %v125_v61 }
 0x438   :  { %213 = vrot.lane.b32.xlu1 %v3371_v45, %s2878_s3 }
 0x43a   :  { %v460_v46 = vpop.permute.xlu1 %459  ;;  %v273_v5 = vpop.permute.xlu0 %272 }
 0x43b   :  { %v3376_v47 = vadd.f32 %v3071_v17, %v460_v46 }
 0x43c   :  { %237 = vrot.lane.b32.xlu1 %v3371_v45, %s2877_s25 }
 0x43d   :  { %547 = vrot.lane.b32.xlu0 %v3376_v47, %s2878_s3 }
 0x43f   :  { %v251_v12 = vpop.permute.xlu1 %250 }
 0x440   :  { %567 = vrot.lane.b32.xlu1 %v3376_v47, %s2877_s25 }
 0x441   :  { %306 = vperm.xlu0 %2795, %v3309_v52   ;;  %v613_v21 = vpop.permute.xlu0 %612 }
 0x443   :  { %v577_v17 = vpop.permute.xlu1 %576 }
 0x444   :  { %624 = vperm.xlu1 %2796, %v3324_v9  }
 0x445   :  { %585 = vrot.lane.b32.xlu0 %v3376_v47, %s2879_s0 }
 0x446   :  { %2798 = vset.pattern.permute.xlu0 %v2871_v14 }
 0x448   :  { %259 = vrot.lane.b32.xlu1 %v3371_v45, %s2879_s0 }
 0x449   :  { %642 = vperm.xlu0 %2798, %v3324_v9   ;;  %2797 = vset.pattern.permute.xlu1 %v2871_v14  ;;  %v704_v14 = vld [vmem:[%s3569_s14 + $0x8] sm:$0xff]  ;;  %s2419_s14 = sld [smem:[#allocation3 + $0x1]] }
 0x44c   :  { %328 = vperm.xlu1 %2797, %v3309_v52  }
 0x44d   :  { %2799 = vset.pattern.permute.xlu0 %v2875_v19 }
 0x44e   :  { %350 = vperm.xlu0 %2799, %v3309_v52  }
 0x450   :  { %281 = vrot.lane.b32.xlu1 %v3371_v45, %s2880_s7 }
 0x451   :  { %2800 = vset.pattern.permute.xlu1 %v2875_v19 }
 0x452   :  { %2802 = vset.pattern.permute.xlu0 %v2873_v16 }
 0x453   :  { %678 = vperm.xlu0 %2802, %v3324_v9  }
 0x454   :  { %603 = vrot.lane.b32.xlu1 %v3376_v47, %s2880_s7 }
 0x457   :  { %2803 = vset.pattern.permute.xlu0 %v2874_v18 }
 0x458   :  { %660 = vperm.xlu1 %2800, %v3324_v9   ;;  %394 = vperm.xlu0 %2803, %v3309_v52  }
 0x45c   :  { %2801 = vset.pattern.permute.xlu1 %v2873_v16  ;;  %2804 = vset.pattern.permute.xlu0 %v2867_v2  ;;  %v402_v16 = vld [vmem:[%s3565_s10 + $0x8] sm:$0xff]  ;;  %s717_s10 = sld [smem:[#allocation3]] }
 0x45d   :  { %372 = vperm.xlu1 %2801, %v3309_v52   ;;  %228 = vperm.xlu0 %2804, %v3309_v52  }
 0x461   :  { %315 = vrot.lane.b32.xlu1 %v3371_v45, %s2881_s11  ;;  %558 = vperm.xlu0 %2804, %v3324_v9  }
 0x462   :  { %2805 = vset.pattern.permute.xlu1 %v2874_v18 }
 0x465   :  { %633 = vrot.lane.b32.xlu1 %v3376_v47, %s2881_s11  ;;  %651 = vrot.lane.b32.xlu0 %v3376_v47, %s2883_s24 }
 0x469   :  { %696 = vperm.xlu1 %2805, %v3324_v9   ;;  %669 = vrot.lane.b32.xlu0 %v3376_v47, %s2882_s29 }
 0x46d   :  { %337 = vrot.lane.b32.xlu1 %v3371_v45, %s2883_s24  ;;  %712 = vperm.xlu0 %2804, %v704_v14  }
 0x46e   :  { %2806 = vset.pattern.permute.xlu1 %v2867_v2  ;;  %v595_v2 = vpop.permute.xlu1 %594 }
 0x471   :  { %359 = vrot.lane.b32.xlu1 %v3371_v45, %s2882_s29 }
 0x472   :  { %v295_v48 = vpop.permute.xlu1 %294 }
 0x475   :  { %410 = vperm.xlu1 %2806, %v402_v16  }
 0x479   :  { %381 = vrot.lane.b32.xlu1 %v3371_v45, %s2886_s16 }
 0x47d   :  { %687 = vrot.lane.b32.xlu1 %v3376_v47, %s2886_s16 }
 0x492   :  { %v3436_v18 = vpop.f32.mrb[4].mxu0 }
 0x493   :  { %v2603_v19 = vpop.f32.mrb[5].mxu0 }
 0x4aa   :  { %v214_v20 = vpop.permute.xlu1 %213 }
 0x4ab   :  { %v220_v40 = vmul.f32 %v3202_v27, %v214_v20 }
 0x4ae   :  { %v238_v23 = vpop.permute.xlu1 %237 }
 0x4af   :  { %v548_v50 = vpop.permute.xlu0 %547  ;;  %v244_v52 = vmul.f32 %v3200_v26, %v238_v23 }
 0x4b0   :  { %v550_v41 = vmul.f32 %v548_v50, %v3202_v27 }
 0x4b1   :  { %v254_v15 = vmul.f32 %v251_v12, %v244_v52 }
 0x4b2   :  { %v568_v29 = vpop.permute.xlu1 %567 }
 0x4b3   :  { %v570_v9 = vmul.f32 %v568_v29, %v3200_v26 }
 0x4b5   :  { %v580_v38 = vmul.f32 %v577_v17, %v570_v9 }
 0x4c0   :  { %v307_v60 = vpop.permute.xlu0 %306 }
 0x4c1   :  { %v310_v50 = vmul.f32 %v307_v60, %v3371_v45 }
 0x4c3   :  { %v625_v62 = vpop.permute.xlu1 %624 }
 0x4c4   :  { %v586_v3 = vpop.permute.xlu0 %585 }
 0x4c5   :  { %v588_v42 = vmul.f32 %v586_v3, %v3204_v32 }
 0x4c7   :  { %v260_v28 = vpop.permute.xlu1 %259  ;;  %v598_v55 = vmul.f32 %v595_v2, %v588_v42  ;;  %v628_v2 = vmul.f32 %v625_v62, %v3376_v47 }
 0x4c8   :  { %v643_v51 = vpop.permute.xlu0 %642  ;;  %v266_v43 = vmul.f32 %v3204_v32, %v260_v28 }
 0x4ca   :  { %v276_v27 = vmul.f32 %v273_v5, %v266_v43 }
 0x4cb   :  { %v329_v0 = vpop.permute.xlu1 %328 }
 0x4cd   :  { %v351_v31 = vpop.permute.xlu0 %350 }
 0x4cf   :  { %v282_v59 = vpop.permute.xlu1 %281 }
 0x4d0   :  { %v288_v26 = vmul.f32 %v3208_v35, %v282_v59 }
 0x4d2   :  { %v3438_v63 = vpop.permute.xlu0 %678  ;;  %v298_v17 = vmul.f32 %v295_v48, %v288_v26 }
 0x4d3   :  { %v604_v33 = vpop.permute.xlu1 %603 }
 0x4d4   :  { %v606_v61 = vmul.f32 %v604_v33, %v3208_v35 }
 0x4d6   :  { %v616_v32 = vmul.f32 %v613_v21, %v606_v61 }
 0x4d7   :  { %v661_v1 = vpop.permute.xlu1 %660  ;;  %v3440_v30 = vpop.f32.mrb[6].mxu0 }
 0x4d8   :  { %v3442_v53 = vpop.permute.xlu0 %394  ;;  %v2613_v34 = vpop.f32.mrb[7].mxu0 }
 0x4dc   :  { %v229_v4 = vpop.permute.xlu0 %228  ;;  %v373_v7 = vpop.permute.xlu1 %372 }
 0x4dd   :  { %v232_v6 = vmul.f32 %v229_v4, %v220_v40 }
 0x4df   :  { %v3444_v37 = vpop.f32.mrb[8].mxu0  ;;  %v256_v58 = vadd.f32 %v254_v15, %v232_v6 }
 0x4e0   :  { %v559_v54 = vpop.permute.xlu0 %558  ;;  %v316_v39 = vpop.permute.xlu1 %315 }
 0x4e1   :  { %v2623_v10 = vpop.f32.mrb[9].mxu0  ;;  %v562_v11 = vmul.f32 %v559_v54, %v550_v41  ;;  %v278_v14 = vadd.f32 %v276_v27, %v256_v58  ;;  %v322_v5 = vmul.f32 %v3214_v8, %v316_v39  ;;  %v721_v27 = vstv %s2419_s14 }
 0x4e3   :  { %v582_v22 = vadd.f32 %v580_v38, %v562_v11  ;;  %v300_v20 = vadd.f32 %v298_v17, %v278_v14  ;;  %v332_v54 = vmul.f32 %v329_v0, %v322_v5 }
 0x4e4   :  { %v634_v13 = vpop.permute.xlu1 %633  ;;  %v652_v29 = vpop.permute.xlu0 %651 }
 0x4e5   :  { %v3452_v44 = vpop.f32.mrb[10].mxu0  ;;  %v600_v16 = vadd.f32 %v598_v55, %v582_v22  ;;  %v636_v35 = vmul.f32 %v634_v13, %v3214_v8  ;;  %v312_v33 = vadd.f32 %v310_v50, %v300_v20  ;;  %v654_v45 = vmul.f32 %v652_v29, %v3217_v25 }
 0x4e6   :  { %v2633_v57 = vpop.f32.mrb[11].mxu0  ;;  %v718_v55 = vstv %s717_s10 }
 0x4e7   :  { %v618_v23 = vadd.f32 %v616_v32, %v600_v16  ;;  %v646_v60 = vmul.f32 %v643_v51, %v636_v35  ;;  %v334_v62 = vadd.f32 %v332_v54, %v312_v33  ;;  %v664_v9 = vmul.f32 %v661_v1, %v654_v45 }
 0x4e8   :  { %v697_v56 = vpop.permute.xlu1 %696  ;;  %v670_v47 = vpop.permute.xlu0 %669 }
 0x4e9   :  { %v630_v34 = vadd.f32 %v628_v2, %v618_v23  ;;  %v672_v10 = vmul.f32 %v670_v47, %v3222_v36 }
 0x4ea   :  { %v3456_v46 = vpop.f32.mrb[12].mxu0 }
 0x4eb   :  { %v2643_v19 = vpop.f32.mrb[13].mxu0  ;;  %v648_v39 = vadd.f32 %v646_v60, %v630_v34 }
 0x4ec   :  { %v338_v12 = vpop.permute.xlu1 %337  ;;  %v713_v22 = vpop.permute.xlu0 %712 }
 0x4ed   :  { %v344_v28 = vmul.f32 %v3217_v25, %v338_v12  ;;  %v666_v0 = vadd.f32 %v664_v9, %v648_v39 }
 0x4ef   :  { %v354_v40 = vmul.f32 %v351_v31, %v344_v28  ;;  %v682_v31 = vmul.f32 %v3438_v63, %v672_v10  ;;  %v1342_v63 = vmul.f32 1.442695, %v3444_v37 }
 0x4f0   :  { %v360_v3 = vpop.permute.xlu1 %359 }
 0x4f1   :  { %v366_v48 = vmul.f32 %v3222_v36, %v360_v3  ;;  %v356_v6 = vadd.f32 %v354_v40, %v334_v62  ;;  %v684_v43 = vadd.f32 %v682_v31, %v666_v0 }
 0x4f2   :  { %v3463_v59 = vpop.f32.mrb[14].mxu0 }
 0x4f3   :  { %v2653_v21 = vpop.f32.mrb[15].mxu0  ;;  %v376_v52 = vmul.f32 %v373_v7, %v366_v48 }
 0x4f4   :  { %v411_v4 = vpop.permute.xlu1 %410 }
 0x4f5   :  { %v378_v15 = vadd.f32 %v376_v52, %v356_v6 }
 0x4f8   :  { %v382_v8 = vpop.permute.xlu1 %381  ;;  %v2054_v41 = vpop.f32.mrb[16].mxu0 }
 0x4f9   :  { %v388_v11 = vmul.f32 %v3231_v24, %v382_v8  ;;  %v2663_v13 = vpop.f32.mrb[17].mxu0  ;;  %v2058_v29 = vmul.f32 1.442695, %v2054_v41 }
 0x4fb   :  { %v398_v25 = vmul.f32 %v3442_v53, %v388_v11  ;;  %v1521_v53 = vmul.f32 1.442695, %v3452_v44  ;;  %v1700_v44 = vmul.f32 1.442695, %v3456_v46 }
 0x4fc   :  { %v688_v51 = vpop.permute.xlu1 %687 }
 0x4fd   :  { %v400_v38 = vadd.f32 %v398_v25, %v378_v15  ;;  %v690_v7 = vmul.f32 %v3231_v24, %v688_v51  ;;  %v2233_v42 = vpop.f32.mrb[18].mxu0  ;;  %v991_v24 = vmul.f32 1.442695, %v3436_v18 }
 0x4fe   :  { %v2673_v1 = vpop.f32.mrb[19].mxu0  ;;  %v2237_v50 = vmul.f32 1.442695, %v2233_v42 }
 0x4ff   :  { %v700_v36 = vmul.f32 %v697_v56, %v690_v7  ;;  %v414_v57 = vadd.f32 %v411_v4, %v400_v38  ;;  %2819 = vpow2.f32 %v991_v24  ;;  %v1162_v56 = vmul.f32 1.442695, %v3440_v30 }
 0x500   :  { %2821 = vpow2.f32 %v1342_v63  ;;  %v1879_v30 = vmul.f32 1.442695, %v3463_v59 }
 0x501   :  { %v702_v58 = vadd.f32 %v700_v36, %v684_v43  ;;  %v719_v61 = vmul.f32 %v718_v55, %v414_v57  ;;  %2823 = vpow2.f32 %v1521_v53 }
 0x502   :  { %2825 = vpow2.f32 %v1162_v56 }
 0x503   :  { %v716_v26 = vadd.f32 %v713_v22, %v702_v58  ;;  %2827 = vpow2.f32 %v1879_v30 }
 0x504   :  { %2829 = vpow2.f32 %v1700_v44 }
 0x505   :  { %v722_v14 = vmul.f32 %v721_v27, %v716_v26  ;;  %2831 = vpow2.f32 %v2237_v50 }
 0x506   :  { %2833 = vpow2.f32 %v2058_v29  ;;  %v2326_v29 = vld [vmem:[%s3572_s17] sm:$0xff] }
 0x507   :  { %v723_v16 = vadd.f32 %v722_v14, %v719_v61 }
 0x509   :  { %1349 = vrot.lane.b32.xlu0 %v723_v16, %s2888_s20  ;;  %1170 = vrot.lane.b32.xlu1 %v723_v16, %s2887_s15  ;;  %v2820_v19 = vpop.eup %2819 }
 0x50a   :  { %2605 = vmatpush3.msra.mxu1 %v723_v16  ;;  %v993_v12 = vsel %vm127_vm0, %v2820_v19, 0.0  ;;  %v2822_v17 = vpop.eup %2821 }
 0x50b   :  { %2614 = vmatprep.subr.mxu1 %v2885_v49  ;;  %v1344_v32 = vsel %vm127_vm0, %v2822_v17, 0.0  ;;  %v2824_v20 = vpop.eup %2823 }
 0x50c   :  { %v2826_v18 = vpop.eup %2825  ;;  %v1523_v23 = vsel %vm127_vm0, %v2824_v20, 0.0 }
 0x50d   :  { %1528 = vrot.lane.b32.xlu1 %v723_v16, %s2889_s21  ;;  %v1164_v37 = vsel %vm127_vm0, %v2826_v18, 0.0  ;;  %v3488_v3 = vpop.eup %2827 }
 0x50e   :  { %v2830_v2 = vpop.eup %2829  ;;  %v1881_v5 = vsel %vm127_vm0, %v3488_v3, 0.0 }
 0x50f   :  { %v3492_v35 = vpop.eup %2831  ;;  %v1702_v28 = vsel %vm127_vm0, %v2830_v2, 0.0 }
 0x510   :  { %v3495_v59 = vpop.eup %2833  ;;  %v2239_v46 = vsel %vm127_vm0, %v3492_v35, 0.0 }
 0x511   :  { %v2060_v33 = vsel %vm127_vm0, %v3495_v59, 0.0 }
 0x528   :  { %994 = vadd.xlane.f32.xlu0 %v993_v12  ;;  %v2328_v12 = vld [vmem:[%s3573_s18] sm:$0xff] }
 0x52c   :  { %1345 = vadd.xlane.f32.xlu0 %v1344_v32 }
 0x530   :  { %1524 = vadd.xlane.f32.xlu0 %v1523_v23 }
 0x531   :  { %1165 = vadd.xlane.f32.xlu1 %v1164_v37 }
 0x542   :  { %1707 = vrot.lane.b32.xlu1 %v723_v16, %s2890_s1 }
 0x546   :  { %1886 = vrot.lane.b32.xlu0 %v723_v16, %s2891_s6 }
 0x565   :  { %1882 = vadd.xlane.f32.xlu0 %v1881_v5 }
 0x566   :  { %1703 = vadd.xlane.f32.xlu1 %v1702_v28 }
 0x569   :  { %2240 = vadd.xlane.f32.xlu0 %v2239_v46 }
 0x56a   :  { %2061 = vadd.xlane.f32.xlu1 %v2060_v33 }
 0x57b   :  { %2065 = vrot.lane.b32.xlu1 %v723_v16, %s2892_s22  ;;  %v1350_v34 = vpop.permute.xlu0 %1349  ;;  %v1171_v48 = vpop.permute.xlu1 %1170 }
 0x57f   :  { %2244 = vrot.lane.b32.xlu0 %v723_v16, %s2893_s4  ;;  %v1529_v4 = vpop.permute.xlu1 %1528 }
 0x5b5   :  { %v995_v21 = vpop.xlane.xlu0 %994 }
 0x5b6   :  { %2835 = vrcp.f32 %v995_v21 }
 0x5b9   :  { %v1346_v54 = vpop.xlane.xlu0 %1345 }
 0x5bd   :  { %v1525_v47 = vpop.xlane.xlu0 %1524 }
 0x5be   :  { %v1166_v45 = vpop.xlane.xlu1 %1165 }
 0x5bf   :  { %2837 = vrcp.f32 %v1166_v45 }
 0x5c0   :  { %v2836_v60 = vpop.eup %2835  ;;  %2839 = vrcp.f32 %v1346_v54 }
 0x5c1   :  { %v997_v40 = vmul.f32 %v2836_v60, %v2820_v19  ;;  %2841 = vrcp.f32 %v1525_v47  ;;  %v1887_v6 = vpop.permute.xlu0 %1886 }
 0x5c2   :  { %v1708_v10 = vpop.permute.xlu1 %1707 }
 0x5c3   :  { %2607 = vmatmul.mubr.msk.f32.vlgmr.msra.gmra.mrb[4].mxu1 %vm127_vm0, %v997_v40 }
 0x5c4   :  { %2615 = vmatpush3.msra.mxu1 %v1171_v48  ;;  %2616 = vmatprep.mubr.msk.f32.mxu1 %vm2884_vm1, %v2885_v49 }
 0x5c5   :  { %2624 = vmatprep.subr.mxu1 %v2885_v49 }
 0x5c9   :  { %v2838_v62 = vpop.eup %2837 }
 0x5ca   :  { %v1168_v39 = vmul.f32 %v2838_v62, %v2826_v18  ;;  %v2840_v52 = vpop.eup %2839 }
 0x5cb   :  { %v1348_v8 = vmul.f32 %v2840_v52, %v2822_v17  ;;  %v2842_v41 = vpop.eup %2841 }
 0x5cc   :  { %2617 = vmatmul.mubr.msk.f32.vlgmr.msra.gmra.mrb[6].mxu1 %vm127_vm0, %v1168_v39  ;;  %v1527_v9 = vmul.f32 %v2842_v41, %v2824_v20 }
 0x5cd   :  { %2625 = vmatpush3.msra.mxu1 %v1350_v34  ;;  %2626 = vmatprep.mubr.msk.f32.mxu1 %vm2884_vm1, %v2885_v49 }
 0x5ce   :  { %2634 = vmatprep.subr.mxu1 %v2885_v49 }
 0x5d0   :  { %2627 = vmatmul.mubr.msk.f32.vlgmr.msra.gmra.mrb[8].mxu1 %vm127_vm0, %v1348_v8 }
 0x5d1   :  { %2635 = vmatpush3.msra.mxu1 %v1529_v4  ;;  %2636 = vmatprep.mubr.msk.f32.mxu1 %vm2884_vm1, %v2885_v49 }
 0x5d2   :  { %2644 = vmatprep.subr.mxu1 %v2885_v49 }
 0x5d4   :  { %2637 = vmatmul.mubr.msk.f32.vlgmr.msra.gmra.mrb[10].mxu1 %vm127_vm0, %v1527_v9 }
 0x5d5   :  { %2645 = vmatpush3.msra.mxu1 %v1708_v10  ;;  %2646 = vmatprep.mubr.msk.f32.mxu1 %vm2884_vm1, %v2885_v49 }
 0x5d6   :  { %2654 = vmatprep.subr.mxu1 %v2885_v49 }
 0x5f2   :  { %v1883_v11 = vpop.xlane.xlu0 %1882 }
 0x5f3   :  { %v1704_v13 = vpop.xlane.xlu1 %1703 }
 0x5f4   :  { %2843 = vrcp.f32 %v1704_v13 }
 0x5f5   :  { %2845 = vrcp.f32 %v1883_v11 }
 0x5f6   :  { %v2241_v15 = vpop.xlane.xlu0 %2240 }
 0x5f7   :  { %v2062_v0 = vpop.xlane.xlu1 %2061 }
 0x5f8   :  { %2847 = vrcp.f32 %v2062_v0 }
 0x5f9   :  { %2849 = vrcp.f32 %v2241_v15 }
 0x5fa   :  { %v2245_v36 = vpop.permute.xlu0 %2244 }
 0x5fb   :  { %v2066_v42 = vpop.permute.xlu1 %2065 }
 0x5fe   :  { %v2844_v25 = vpop.eup %2843 }
 0x5ff   :  { %v1706_v51 = vmul.f32 %v2844_v25, %v2830_v2  ;;  %v2846_v31 = vpop.eup %2845 }
 0x600   :  { %v1885_v38 = vmul.f32 %v2846_v31, %v3488_v3 }
 0x601   :  { %2647 = vmatmul.mubr.msk.f32.vlgmr.msra.gmra.mrb[12].mxu1 %vm127_vm0, %v1706_v51 }
 0x602   :  { %2655 = vmatpush3.msra.mxu1 %v1887_v6  ;;  %2656 = vmatprep.mubr.msk.f32.mxu1 %vm2884_vm1, %v2885_v49  ;;  %v2848_v7 = vpop.eup %2847 }
 0x603   :  { %2664 = vmatprep.subr.mxu1 %v2885_v49  ;;  %v2064_v1 = vmul.f32 %v2848_v7, %v3495_v59  ;;  %v2850_v43 = vpop.eup %2849  ;;  %v2851_v59 = vld [vmem:[%s3582_s26] sm:$0xff] }
 0x604   :  { %v2243_v57 = vmul.f32 %v2850_v43, %v3492_v35 }
 0x605   :  { %2657 = vmatmul.mubr.msk.f32.vlgmr.msra.gmra.mrb[14].mxu1 %vm127_vm0, %v1885_v38 }
 0x606   :  { %2665 = vmatpush3.msra.mxu1 %v2066_v42  ;;  %2666 = vmatprep.mubr.msk.f32.mxu1 %vm2884_vm1, %v2885_v49 }
 0x607   :  { %2674 = vmatprep.subr.mxu1 %v2885_v49 }
 0x609   :  { %2667 = vmatmul.mubr.msk.f32.vlgmr.msra.gmra.mrb[16].mxu1 %vm127_vm0, %v2064_v1 }
 0x60a   :  { %2675 = vmatpush3.msra.mxu1 %v2245_v36  ;;  %2676 = vmatprep.mubr.msk.f32.mxu1 %vm2884_vm1, %v2885_v49 }
 0x60d   :  { %2677 = vmatmul.mubr.msk.f32.vlgmr.msra.gmra.mrb[18].mxu1 %vm127_vm0, %v2243_v57 }
 0x696   :  { %v1067_v58 = vpop.f32.mrb[4].mxu1 }
 0x697   :  { %1071 = vst.msk [vmem:[#allocation2] sm:$0xff] %vm914_vm6, %v1067_v58  ;;  %v2608_v22 = vpop.f32.mrb[5].mxu1 }
 0x69f   :  { %v1242_v55 = vpop.f32.mrb[6].mxu1 }
 0x6a0   :  { %v2618_v27 = vpop.f32.mrb[7].mxu1  ;;  %1247 = vrot.lane.b32.xlu1 %v1242_v55, %s2893_s4 }
 0x6a3   :  { %v1421_v26 = vpop.f32.mrb[8].mxu1 }
 0x6a4   :  { %v2628_v61 = vpop.f32.mrb[9].mxu1  ;;  %1426 = vrot.lane.b32.xlu0 %v1421_v26, %s2892_s22 }
 0x6a7   :  { %v1600_v14 = vpop.f32.mrb[10].mxu1 }
 0x6a8   :  { %v2638_v16 = vpop.f32.mrb[11].mxu1  ;;  %1605 = vrot.lane.b32.xlu1 %v1600_v14, %s2891_s6 }
 0x6d4   :  { %v1779_v49 = vpop.f32.mrb[12].mxu1 }
 0x6d5   :  { %v2648_v24 = vpop.f32.mrb[13].mxu1  ;;  %1784 = vrot.lane.b32.xlu0 %v1779_v49, %s2890_s1 }
 0x6d8   :  { %v1958_v63 = vpop.f32.mrb[14].mxu1 }
 0x6d9   :  { %v2658_v53 = vpop.f32.mrb[15].mxu1  ;;  %1963 = vrot.lane.b32.xlu1 %v1958_v63, %s2889_s21 }
 0x6dc   :  { %v2137_v56 = vpop.f32.mrb[16].mxu1 }
 0x6dd   :  { %v2668_v19 = vpop.f32.mrb[17].mxu1  ;;  %2142 = vrot.lane.b32.xlu0 %v2137_v56, %s2888_s20 }
 0x6e0   :  { %v2316_v17 = vpop.f32.mrb[18].mxu1 }
 0x6e1   :  { %2331 = vperm.xlu0 %2804, %v2328_v12   ;;  %2321 = vrot.lane.b32.xlu1 %v2316_v17, %s2887_s15  ;;  %v2678_v32 = vpop.f32.mrb[19].mxu1 }
 0x712   :  { %v1248_v20 = vpop.permute.xlu1 %1247 }
 0x713   :  { %1251 = vst.msk [vmem:[#allocation2] sm:$0xff] %vm1250_vm7, %v1248_v20 }
 0x716   :  { %v1427_v18 = vpop.permute.xlu0 %1426 }
 0x717   :  { %1430 = vst.msk [vmem:[#allocation2] sm:$0xff] %vm1429_vm8, %v1427_v18 }
 0x71a   :  { %v1606_v23 = vpop.permute.xlu1 %1605 }
 0x71b   :  { %1609 = vst.msk [vmem:[#allocation2] sm:$0xff] %vm1608_vm9, %v1606_v23 }
 0x747   :  { %v1785_v37 = vpop.permute.xlu0 %1784 }
 0x748   :  { %1788 = vst.msk [vmem:[#allocation2] sm:$0xff] %vm1787_vm10, %v1785_v37 }
 0x74b   :  { %v1964_v30 = vpop.permute.xlu1 %1963 }
 0x74c   :  { %1967 = vst.msk [vmem:[#allocation2] sm:$0xff] %vm1966_vm11, %v1964_v30 }
 0x74f   :  { %v2143_v44 = vpop.permute.xlu0 %2142 }
 0x750   :  { %2146 = vst.msk [vmem:[#allocation2] sm:$0xff] %vm2145_vm12, %v2143_v44 }
 0x753   :  { %v2322_v50 = vpop.permute.xlu1 %2321 }
 0x754   :  { %2325 = vst.msk [vmem:[#allocation2] sm:$0xff] %vm2324_vm13, %v2322_v50 }
 0x75b   :  { %v2327_v3 = vld [vmem:[#allocation2] sm:$0xff] }
 0x75c   :  { %2680 = vmatpush3.msra.mxu0 %v2327_v3 }
 0x75d   :  { %2682 = vmatmul.mubr.msk.f32.vlgmr.msra.gmra.mrb[20].mxu0 %vm127_vm0, %v2326_v29 }
 0x760   :  { %v2332_v2 = vpop.permute.xlu0 %2331 }
 0x830   :  { %v2403_v5 = vpop.f32.mrb[20].mxu0 }
 0x831   :  { %v2404_v35 = vadd.f32 %v2403_v5, %v2332_v2  ;;  %v2683_v28 = vpop.f32.mrb[21].mxu0 }
 0x833   :  { %v2407_v46 = vadd.f32 %v2851_v59, %v2404_v35 }
 0x835   :  { %2408 = vst [vmem:[%s3574_s19] sm:$0xff] %v2407_v46 }
 0x836   :  { %2413 = vsyncpa [#allocation4], 1 }

</bundles_post_ra>
